<compile_context>
chip_gen: v5e
topology: v5e:2x2
jax: 0.10.0
libtpu: 0.0.40
codegen_flags: <defaults>
</compile_context>

<pallas_src>
import functools
import math

import jax
import jax.numpy as jnp
from jax import lax
from jax.experimental import pallas as pl
from jax.experimental.pallas import tpu as pltpu


def _patch_merging_kernel(x_ref, gb_ref, w_ref, o_ref, *, eps, th):
    # x_ref : (TH, 2, WO, 2C)  row-pair tile in the ORIGINAL memory layout.
    #         x_ref[i, p, w, :] = [chans of col 2w | chans of col 2w+1] of
    #         image row 2*(row)+p.
    # gb_ref: (4, 2C) f32 = [gamma_even, gamma_odd, beta_even, beta_odd],
    #         already permuted to this natural channel order.
    # w_ref : (2, 2C, 2Cout) f32 = [W_even_rows, W_odd_rows] (permuted rows of
    #         the (4C, 2Cout) reduction weight).
    # o_ref : (TH, WO, 2Cout)
    inv_n4c = 1.0 / (2.0 * x_ref.shape[-1])   # 1 / (4C)
    ge = gb_ref[0:1, :]
    go = gb_ref[1:2, :]
    be = gb_ref[2:3, :]
    bo = gb_ref[3:4, :]
    for i in range(th):                        # static unroll over row pairs
        xe = x_ref[i, 0].astype(jnp.float32)   # (WO, 2C) even image row
        xo = x_ref[i, 1].astype(jnp.float32)   # (WO, 2C) odd  image row
        mean = (jnp.sum(xe, axis=-1, keepdims=True)
                + jnp.sum(xo, axis=-1, keepdims=True)) * inv_n4c
        xec = xe - mean
        xoc = xo - mean
        var = (jnp.sum(xec * xec, axis=-1, keepdims=True)
               + jnp.sum(xoc * xoc, axis=-1, keepdims=True)) * inv_n4c
        inv = lax.rsqrt(var + eps)
        xne = xec * inv * ge + be
        xno = xoc * inv * go + bo
        y = (jnp.dot(xne, w_ref[0], preferred_element_type=jnp.float32)
             + jnp.dot(xno, w_ref[1], preferred_element_type=jnp.float32))
        o_ref[i] = y.astype(o_ref.dtype)


class PatchMerging:
    """Patch Merging Layer (fused gather + LayerNorm + reduction on TPU)."""

    def __init__(self, input_resolution, dim, key=None,
                 param_dtype=jnp.float32, eps=1e-5,
                 max_rows_per_step=32, max_block_bytes=2 << 20):
        self.input_resolution = tuple(int(v) for v in input_resolution)
        self.dim = int(dim)
        self.eps = float(eps)
        self.max_rows_per_step = int(max_rows_per_step)
        self.max_block_bytes = int(max_block_bytes)

        if key is None:
            key = jax.random.PRNGKey(0)
        bound = 1.0 / math.sqrt(4 * dim)
        # nn.Linear(4*dim, 2*dim, bias=False) weight stored as (in, out) so the
        # kernel computes x @ w directly on the MXU. Channel (row) order is the
        # torch order [x0|x1|x2|x3].
        self.reduction_weight = jax.random.uniform(
            key, (4 * dim, 2 * dim), minval=-bound, maxval=bound,
            dtype=param_dtype)
        # nn.LayerNorm(4*dim) defaults: weight=1, bias=0 (torch channel order).
        self.norm_gamma = jnp.ones((4 * dim,), param_dtype)
        self.norm_beta = jnp.zeros((4 * dim,), param_dtype)

    def _choose_th(self, ho, wo, c, itemsize):
        """Largest divisor of ho (<= cap) whose input block fits the budget."""
        th = 1
        for d in range(1, min(ho, self.max_rows_per_step) + 1):
            if ho % d:
                continue
            blk_bytes = d * 2 * wo * 2 * c * itemsize
            if blk_bytes <= self.max_block_bytes or d == 1:
                th = d
        return th

    def __call__(self, x):
        h, w = self.input_resolution
        b, seq_len, c = x.shape
        assert seq_len == h * w, 'input feature has wrong size'
        assert h % 2 == 0 and w % 2 == 0, f'x size ({h}*{w}) are not even.'
        assert c == self.dim, f'C={c} must equal dim={self.dim}'

        ho, wo = h // 2, w // 2
        l_out = ho * wo
        c2 = 2 * c          # per-parity channel group AND output channel count

        # Free view (pure reshape, no transpose, no copy):
        #   (B, H*W, C) -> (B, H/2, 2, W/2, 2C)
        xv = x.reshape(b, ho, 2, wo, c2)

        # Permute LayerNorm / reduction params from torch channel order
        # [x0|x1|x2|x3] to the kernel's natural order: even row -> [x0|x2],
        # odd row -> [x1|x3]. These are tiny arrays; done per call.
        ar = jnp.arange(c)
        idx_e = jnp.concatenate([ar, 2 * c + ar])   # torch channels of [x0|x2]
        idx_o = idx_e + c                           # torch channels of [x1|x3]
        gamma = self.norm_gamma.astype(jnp.float32)
        beta = self.norm_beta.astype(jnp.float32)
        w_red = self.reduction_weight.astype(jnp.float32)
        gb = jnp.stack([gamma[idx_e], gamma[idx_o],
                        beta[idx_e], beta[idx_o]])          # (4, 2C)
        w2 = jnp.stack([w_red[idx_e, :], w_red[idx_o, :]])  # (2, 2C, 2Cout)

        in_isz = jnp.dtype(x.dtype).itemsize
        th = self._choose_th(ho, wo, c, in_isz)

        cost = pl.CostEstimate(
            flops=2 * b * l_out * (4 * c) * c2 + 10 * b * l_out * 4 * c,
            transcendentals=b * l_out,   # one rsqrt per merged row
            bytes_accessed=b * seq_len * c * in_isz
            + b * l_out * c2 * in_isz
            + (4 * c2 + 2 * c2 * c2) * 4,
        )

        kernel = functools.partial(_patch_merging_kernel, eps=self.eps, th=th)

        out4 = pl.pallas_call(
            kernel,
            out_shape=jax.ShapeDtypeStruct((b, ho, wo, c2), x.dtype),
            grid_spec=pltpu.PrefetchScalarGridSpec(
                num_scalar_prefetch=0,
                grid=(b, ho // th),
                in_specs=[
                    # Activations: squeeze batch, TH row pairs, both parities,
                    # full W/2 x 2C (last two dims == full array dims).
                    pl.BlockSpec((None, th, 2, wo, c2),
                                 lambda bi, hi: (bi, hi, 0, 0, 0)),
                    # LayerNorm params (resident, constant index_map).
                    pl.BlockSpec((4, c2), lambda bi, hi: (0, 0)),
                    # Reduction weight split by row parity (resident).
                    pl.BlockSpec((2, c2, c2), lambda bi, hi: (0, 0, 0)),
                ],
                out_specs=pl.BlockSpec((None, th, wo, c2),
                                       lambda bi, hi: (bi, hi, 0, 0)),
            ),
            compiler_params=pltpu.CompilerParams(
                dimension_semantics=("parallel", "parallel"),
            ),
            cost_estimate=cost,
        )(xv, gb, w2)

        # Free reshape (contiguous): (B, H/2, W/2, 2C) -> (B, H/2*W/2, 2C)
        return out4.reshape(b, l_out, c2)


def _reference(x, input_resolution, gamma, beta, w_red, eps):
    """Pure-JAX replica of the torch forward (strided slices + concat)."""
    h, w = input_resolution
    b, _, c = x.shape
    x4 = x.reshape(b, h, w, c)
    x0 = x4[:, 0::2, 0::2, :]
    x1 = x4[:, 1::2, 0::2, :]
    x2 = x4[:, 0::2, 1::2, :]
    x3 = x4[:, 1::2, 1::2, :]
    xm = jnp.concatenate([x0, x1, x2, x3], axis=-1).reshape(b, -1, 4 * c)
    xm = xm.astype(jnp.float32)
    mean = jnp.mean(xm, axis=-1, keepdims=True)
    var = jnp.mean((xm - mean) ** 2, axis=-1, keepdims=True)
    xn = (xm - mean) / jnp.sqrt(var + eps) * gamma.astype(jnp.float32) \
        + beta.astype(jnp.float32)
    return jnp.dot(xn, w_red.astype(jnp.float32),
                   precision=lax.Precision.HIGHEST).astype(x.dtype)


if __name__ == "__main__":
    # Small shapes consistent with the module: batch=2, dim=64, spatial 16x16.
    B, H, W, C = 2, 16, 16, 64
    L = H * W

    key = jax.random.PRNGKey(0)
    kx, kw, kg, kb = jax.random.split(key, 4)
    x = jax.random.normal(kx, (B, L, C), dtype=jnp.float32)

    module = PatchMerging(input_resolution=(H, W), dim=C, key=kw)
    # Non-trivial LayerNorm affine params so the channel-permutation path is
    # actually exercised by the check (defaults are gamma=1, beta=0).
    module.norm_gamma = 1.0 + 0.1 * jax.random.normal(kg, (4 * C,), jnp.float32)
    module.norm_beta = 0.1 * jax.random.normal(kb, (4 * C,), jnp.float32)

    out = module(x)
    out = jax.block_until_ready(out)

    ref = _reference(x, (H, W), module.norm_gamma, module.norm_beta,
                     module.reduction_weight, module.eps)

    assert out.shape == (B, (H // 2) * (W // 2), 2 * C), out.shape
    assert out.dtype == x.dtype
    assert jnp.allclose(out, ref, atol=1e-2, rtol=1e-2), float(
        jnp.max(jnp.abs(out - ref)))

    print("KERNEL_OK")
</pallas_src>

<mosaic_0001>
module attributes {stable_mosaic.version = 11 : i64} {
  func.func @_patch_merging_kernel(%arg0: i32, %arg1: i32, %arg2: memref<1x8x2x8x128xf32, #tpu.memory_space<vmem>>, %arg3: memref<4x128xf32, #tpu.memory_space<vmem>>, %arg4: memref<2x128x128xf32, #tpu.memory_space<vmem>>, %arg5: memref<1x8x8x128xf32, #tpu.memory_space<vmem>>) attributes {dimension_semantics = [#tpu.dimension_semantics<parallel>, #tpu.dimension_semantics<parallel>], iteration_bounds = array<i64: 2, 1>, scalar_prefetch = 0 : i64, scratch_operands = 0 : i64, tpu.core_type = #tpu.core_type<tc>, window_params = [{transform_indices = @transform_0, window_bounds = array<i64: 1, 8, 2, 8, 128>}, {pipeline_mode = #tpu.pipeline_mode<synchronous>, transform_indices = @transform_1, window_bounds = array<i64: 4, 128>}, {pipeline_mode = #tpu.pipeline_mode<synchronous>, transform_indices = @transform_2, window_bounds = array<i64: 2, 128, 128>}, {transform_indices = @transform_3, window_bounds = array<i64: 1, 8, 8, 128>}]} {
    %c0 = arith.constant 0 : index
    %c0_0 = arith.constant 0 : index
    %0 = vector.load %arg3[%c0, %c0_0] : memref<4x128xf32, #tpu.memory_space<vmem>>, vector<1x128xf32>
    %c1 = arith.constant 1 : index
    %c0_1 = arith.constant 0 : index
    %1 = vector.load %arg3[%c1, %c0_1] : memref<4x128xf32, #tpu.memory_space<vmem>>, vector<1x128xf32>
    %c2 = arith.constant 2 : index
    %c0_2 = arith.constant 0 : index
    %2 = vector.load %arg3[%c2, %c0_2] : memref<4x128xf32, #tpu.memory_space<vmem>>, vector<1x128xf32>
    %c3 = arith.constant 3 : index
    %c0_3 = arith.constant 0 : index
    %3 = vector.load %arg3[%c3, %c0_3] : memref<4x128xf32, #tpu.memory_space<vmem>>, vector<1x128xf32>
    %c0_4 = arith.constant 0 : index
    %c0_5 = arith.constant 0 : index
    %c0_6 = arith.constant 0 : index
    %c0_7 = arith.constant 0 : index
    %c0_8 = arith.constant 0 : index
    %4 = vector.load %arg2[%c0_4, %c0_5, %c0_6, %c0_7, %c0_8] : memref<1x8x2x8x128xf32, #tpu.memory_space<vmem>>, vector<1x1x1x8x128xf32>
    %5 = vector.shape_cast %4 : vector<1x1x1x8x128xf32> to vector<8x128xf32>
    %c0_9 = arith.constant 0 : index
    %c0_10 = arith.constant 0 : index
    %c1_11 = arith.constant 1 : index
    %c0_12 = arith.constant 0 : index
    %c0_13 = arith.constant 0 : index
    %6 = vector.load %arg2[%c0_9, %c0_10, %c1_11, %c0_12, %c0_13] : memref<1x8x2x8x128xf32, #tpu.memory_space<vmem>>, vector<1x1x1x8x128xf32>
    %7 = vector.shape_cast %6 : vector<1x1x1x8x128xf32> to vector<8x128xf32>
    %cst = arith.constant dense<0.000000e+00> : vector<8xf32>
    %8 = vector.multi_reduction <add>, %5, %cst [1] : vector<8x128xf32> to vector<8xf32>
    %9 = vector.shape_cast %8 : vector<8xf32> to vector<8x1xf32>
    %cst_14 = arith.constant dense<0.000000e+00> : vector<8xf32>
    %10 = vector.multi_reduction <add>, %7, %cst_14 [1] : vector<8x128xf32> to vector<8xf32>
    %11 = vector.shape_cast %10 : vector<8xf32> to vector<8x1xf32>
    %12 = arith.addf %9, %11 : vector<8x1xf32>
    %cst_15 = arith.constant 3.906250e-03 : f32
    %13 = vector.broadcast %cst_15 : f32 to vector<8x1xf32>
    %14 = arith.mulf %12, %13 : vector<8x1xf32>
    %15 = vector.broadcast %14 : vector<8x1xf32> to vector<8x128xf32>
    %16 = arith.subf %5, %15 : vector<8x128xf32>
    %17 = vector.broadcast %14 : vector<8x1xf32> to vector<8x128xf32>
    %18 = arith.subf %7, %17 : vector<8x128xf32>
    %19 = arith.mulf %16, %16 : vector<8x128xf32>
    %cst_16 = arith.constant dense<0.000000e+00> : vector<8xf32>
    %20 = vector.multi_reduction <add>, %19, %cst_16 [1] : vector<8x128xf32> to vector<8xf32>
    %21 = vector.shape_cast %20 : vector<8xf32> to vector<8x1xf32>
    %22 = arith.mulf %18, %18 : vector<8x128xf32>
    %cst_17 = arith.constant dense<0.000000e+00> : vector<8xf32>
    %23 = vector.multi_reduction <add>, %22, %cst_17 [1] : vector<8x128xf32> to vector<8xf32>
    %24 = vector.shape_cast %23 : vector<8xf32> to vector<8x1xf32>
    %25 = arith.addf %21, %24 : vector<8x1xf32>
    %cst_18 = arith.constant 3.906250e-03 : f32
    %26 = vector.broadcast %cst_18 : f32 to vector<8x1xf32>
    %27 = arith.mulf %25, %26 : vector<8x1xf32>
    %cst_19 = arith.constant 9.99999974E-6 : f32
    %28 = vector.broadcast %cst_19 : f32 to vector<8x1xf32>
    %29 = arith.addf %27, %28 : vector<8x1xf32>
    %30 = math.rsqrt %29 : vector<8x1xf32>
    %31 = vector.broadcast %30 : vector<8x1xf32> to vector<8x128xf32>
    %32 = arith.mulf %16, %31 : vector<8x128xf32>
    %33 = vector.broadcast %0 : vector<1x128xf32> to vector<8x128xf32>
    %34 = arith.mulf %32, %33 : vector<8x128xf32>
    %35 = vector.broadcast %2 : vector<1x128xf32> to vector<8x128xf32>
    %36 = arith.addf %34, %35 : vector<8x128xf32>
    %37 = vector.broadcast %30 : vector<8x1xf32> to vector<8x128xf32>
    %38 = arith.mulf %18, %37 : vector<8x128xf32>
    %39 = vector.broadcast %1 : vector<1x128xf32> to vector<8x128xf32>
    %40 = arith.mulf %38, %39 : vector<8x128xf32>
    %41 = vector.broadcast %3 : vector<1x128xf32> to vector<8x128xf32>
    %42 = arith.addf %40, %41 : vector<8x128xf32>
    %c0_20 = arith.constant 0 : index
    %c0_21 = arith.constant 0 : index
    %c0_22 = arith.constant 0 : index
    %43 = vector.load %arg4[%c0_20, %c0_21, %c0_22] : memref<2x128x128xf32, #tpu.memory_space<vmem>>, vector<1x128x128xf32>
    %44 = vector.shape_cast %43 : vector<1x128x128xf32> to vector<128x128xf32>
    %cst_23 = arith.constant dense<0.000000e+00> : vector<8x128xf32>
    %45 = tpu.matmul %36, %44, %cst_23 {dimension_numbers = #tpu.dot_dimension_numbers<[1], [0], [0], [1], [0, 0, 1, 1], [], []>} : vector<8x128xf32>, vector<128x128xf32>, vector<8x128xf32> -> vector<8x128xf32>
    %c1_24 = arith.constant 1 : index
    %c0_25 = arith.constant 0 : index
    %c0_26 = arith.constant 0 : index
    %46 = vector.load %arg4[%c1_24, %c0_25, %c0_26] : memref<2x128x128xf32, #tpu.memory_space<vmem>>, vector<1x128x128xf32>
    %47 = vector.shape_cast %46 : vector<1x128x128xf32> to vector<128x128xf32>
    %cst_27 = arith.constant dense<0.000000e+00> : vector<8x128xf32>
    %48 = tpu.matmul %42, %47, %cst_27 {dimension_numbers = #tpu.dot_dimension_numbers<[1], [0], [0], [1], [0, 0, 1, 1], [], []>} : vector<8x128xf32>, vector<128x128xf32>, vector<8x128xf32> -> vector<8x128xf32>
    %49 = arith.addf %45, %48 : vector<8x128xf32>
    %c0_28 = arith.constant 0 : index
    %c0_29 = arith.constant 0 : index
    %c0_30 = arith.constant 0 : index
    %c0_31 = arith.constant 0 : index
    %50 = vector.load %arg5[%c0_28, %c0_29, %c0_30, %c0_31] : memref<1x8x8x128xf32, #tpu.memory_space<vmem>>, vector<1x1x8x128xf32>
    %51 = vector.shape_cast %50 : vector<1x1x8x128xf32> to vector<8x128xf32>
    %52 = vector.shape_cast %49 : vector<8x128xf32> to vector<1x1x8x128xf32>
    tpu.vector_store %arg5[%c0_28, %c0_29, %c0_30, %c0_31], %52 {strides = array<i32>} : memref<1x8x8x128xf32, #tpu.memory_space<vmem>>, vector<1x1x8x128xf32>,
    %c0_32 = arith.constant 0 : index
    %c1_33 = arith.constant 1 : index
    %c0_34 = arith.constant 0 : index
    %c0_35 = arith.constant 0 : index
    %c0_36 = arith.constant 0 : index
    %53 = vector.load %arg2[%c0_32, %c1_33, %c0_34, %c0_35, %c0_36] : memref<1x8x2x8x128xf32, #tpu.memory_space<vmem>>, vector<1x1x1x8x128xf32>
    %54 = vector.shape_cast %53 : vector<1x1x1x8x128xf32> to vector<8x128xf32>
    %c0_37 = arith.constant 0 : index
    %c1_38 = arith.constant 1 : index
    %c1_39 = arith.constant 1 : index
    %c0_40 = arith.constant 0 : index
    %c0_41 = arith.constant 0 : index
    %55 = vector.load %arg2[%c0_37, %c1_38, %c1_39, %c0_40, %c0_41] : memref<1x8x2x8x128xf32, #tpu.memory_space<vmem>>, vector<1x1x1x8x128xf32>
    %56 = vector.shape_cast %55 : vector<1x1x1x8x128xf32> to vector<8x128xf32>
    %cst_42 = arith.constant dense<0.000000e+00> : vector<8xf32>
    %57 = vector.multi_reduction <add>, %54, %cst_42 [1] : vector<8x128xf32> to vector<8xf32>
    %58 = vector.shape_cast %57 : vector<8xf32> to vector<8x1xf32>
    %cst_43 = arith.constant dense<0.000000e+00> : vector<8xf32>
    %59 = vector.multi_reduction <add>, %56, %cst_43 [1] : vector<8x128xf32> to vector<8xf32>
    %60 = vector.shape_cast %59 : vector<8xf32> to vector<8x1xf32>
    %61 = arith.addf %58, %60 : vector<8x1xf32>
    %cst_44 = arith.constant 3.906250e-03 : f32
    %62 = vector.broadcast %cst_44 : f32 to vector<8x1xf32>
    %63 = arith.mulf %61, %62 : vector<8x1xf32>
    %64 = vector.broadcast %63 : vector<8x1xf32> to vector<8x128xf32>
    %65 = arith.subf %54, %64 : vector<8x128xf32>
    %66 = vector.broadcast %63 : vector<8x1xf32> to vector<8x128xf32>
    %67 = arith.subf %56, %66 : vector<8x128xf32>
    %68 = arith.mulf %65, %65 : vector<8x128xf32>
    %cst_45 = arith.constant dense<0.000000e+00> : vector<8xf32>
    %69 = vector.multi_reduction <add>, %68, %cst_45 [1] : vector<8x128xf32> to vector<8xf32>
    %70 = vector.shape_cast %69 : vector<8xf32> to vector<8x1xf32>
    %71 = arith.mulf %67, %67 : vector<8x128xf32>
    %cst_46 = arith.constant dense<0.000000e+00> : vector<8xf32>
    %72 = vector.multi_reduction <add>, %71, %cst_46 [1] : vector<8x128xf32> to vector<8xf32>
    %73 = vector.shape_cast %72 : vector<8xf32> to vector<8x1xf32>
    %74 = arith.addf %70, %73 : vector<8x1xf32>
    %cst_47 = arith.constant 3.906250e-03 : f32
    %75 = vector.broadcast %cst_47 : f32 to vector<8x1xf32>
    %76 = arith.mulf %74, %75 : vector<8x1xf32>
    %cst_48 = arith.constant 9.99999974E-6 : f32
    %77 = vector.broadcast %cst_48 : f32 to vector<8x1xf32>
    %78 = arith.addf %76, %77 : vector<8x1xf32>
    %79 = math.rsqrt %78 : vector<8x1xf32>
    %80 = vector.broadcast %79 : vector<8x1xf32> to vector<8x128xf32>
    %81 = arith.mulf %65, %80 : vector<8x128xf32>
    %82 = vector.broadcast %0 : vector<1x128xf32> to vector<8x128xf32>
    %83 = arith.mulf %81, %82 : vector<8x128xf32>
    %84 = vector.broadcast %2 : vector<1x128xf32> to vector<8x128xf32>
    %85 = arith.addf %83, %84 : vector<8x128xf32>
    %86 = vector.broadcast %79 : vector<8x1xf32> to vector<8x128xf32>
    %87 = arith.mulf %67, %86 : vector<8x128xf32>
    %88 = vector.broadcast %1 : vector<1x128xf32> to vector<8x128xf32>
    %89 = arith.mulf %87, %88 : vector<8x128xf32>
    %90 = vector.broadcast %3 : vector<1x128xf32> to vector<8x128xf32>
    %91 = arith.addf %89, %90 : vector<8x128xf32>
    %c0_49 = arith.constant 0 : index
    %c0_50 = arith.constant 0 : index
    %c0_51 = arith.constant 0 : index
    %92 = vector.load %arg4[%c0_49, %c0_50, %c0_51] : memref<2x128x128xf32, #tpu.memory_space<vmem>>, vector<1x128x128xf32>
    %93 = vector.shape_cast %92 : vector<1x128x128xf32> to vector<128x128xf32>
    %cst_52 = arith.constant dense<0.000000e+00> : vector<8x128xf32>
    %94 = tpu.matmul %85, %93, %cst_52 {dimension_numbers = #tpu.dot_dimension_numbers<[1], [0], [0], [1], [0, 0, 1, 1], [], []>} : vector<8x128xf32>, vector<128x128xf32>, vector<8x128xf32> -> vector<8x128xf32>
    %c1_53 = arith.constant 1 : index
    %c0_54 = arith.constant 0 : index
    %c0_55 = arith.constant 0 : index
    %95 = vector.load %arg4[%c1_53, %c0_54, %c0_55] : memref<2x128x128xf32, #tpu.memory_space<vmem>>, vector<1x128x128xf32>
    %96 = vector.shape_cast %95 : vector<1x128x128xf32> to vector<128x128xf32>
    %cst_56 = arith.constant dense<0.000000e+00> : vector<8x128xf32>
    %97 = tpu.matmul %91, %96, %cst_56 {dimension_numbers = #tpu.dot_dimension_numbers<[1], [0], [0], [1], [0, 0, 1, 1], [], []>} : vector<8x128xf32>, vector<128x128xf32>, vector<8x128xf32> -> vector<8x128xf32>
    %98 = arith.addf %94, %97 : vector<8x128xf32>
    %c0_57 = arith.constant 0 : index
    %c1_58 = arith.constant 1 : index
    %c0_59 = arith.constant 0 : index
    %c0_60 = arith.constant 0 : index
    %99 = vector.load %arg5[%c0_57, %c1_58, %c0_59, %c0_60] : memref<1x8x8x128xf32, #tpu.memory_space<vmem>>, vector<1x1x8x128xf32>
    %100 = vector.shape_cast %99 : vector<1x1x8x128xf32> to vector<8x128xf32>
    %101 = vector.shape_cast %98 : vector<8x128xf32> to vector<1x1x8x128xf32>
    tpu.vector_store %arg5[%c0_57, %c1_58, %c0_59, %c0_60], %101 {strides = array<i32>} : memref<1x8x8x128xf32, #tpu.memory_space<vmem>>, vector<1x1x8x128xf32>,
    %c0_61 = arith.constant 0 : index
    %c2_62 = arith.constant 2 : index
    %c0_63 = arith.constant 0 : index
    %c0_64 = arith.constant 0 : index
    %c0_65 = arith.constant 0 : index
    %102 = vector.load %arg2[%c0_61, %c2_62, %c0_63, %c0_64, %c0_65] : memref<1x8x2x8x128xf32, #tpu.memory_space<vmem>>, vector<1x1x1x8x128xf32>
    %103 = vector.shape_cast %102 : vector<1x1x1x8x128xf32> to vector<8x128xf32>
    %c0_66 = arith.constant 0 : index
    %c2_67 = arith.constant 2 : index
    %c1_68 = arith.constant 1 : index
    %c0_69 = arith.constant 0 : index
    %c0_70 = arith.constant 0 : index
    %104 = vector.load %arg2[%c0_66, %c2_67, %c1_68, %c0_69, %c0_70] : memref<1x8x2x8x128xf32, #tpu.memory_space<vmem>>, vector<1x1x1x8x128xf32>
    %105 = vector.shape_cast %104 : vector<1x1x1x8x128xf32> to vector<8x128xf32>
    %cst_71 = arith.constant dense<0.000000e+00> : vector<8xf32>
    %106 = vector.multi_reduction <add>, %103, %cst_71 [1] : vector<8x128xf32> to vector<8xf32>
    %107 = vector.shape_cast %106 : vector<8xf32> to vector<8x1xf32>
    %cst_72 = arith.constant dense<0.000000e+00> : vector<8xf32>
    %108 = vector.multi_reduction <add>, %105, %cst_72 [1] : vector<8x128xf32> to vector<8xf32>
    %109 = vector.shape_cast %108 : vector<8xf32> to vector<8x1xf32>
    %110 = arith.addf %107, %109 : vector<8x1xf32>
    %cst_73 = arith.constant 3.906250e-03 : f32
    %111 = vector.broadcast %cst_73 : f32 to vector<8x1xf32>
    %112 = arith.mulf %110, %111 : vector<8x1xf32>
    %113 = vector.broadcast %112 : vector<8x1xf32> to vector<8x128xf32>
    %114 = arith.subf %103, %113 : vector<8x128xf32>
    %115 = vector.broadcast %112 : vector<8x1xf32> to vector<8x128xf32>
    %116 = arith.subf %105, %115 : vector<8x128xf32>
    %117 = arith.mulf %114, %114 : vector<8x128xf32>
    %cst_74 = arith.constant dense<0.000000e+00> : vector<8xf32>
    %118 = vector.multi_reduction <add>, %117, %cst_74 [1] : vector<8x128xf32> to vector<8xf32>
    %119 = vector.shape_cast %118 : vector<8xf32> to vector<8x1xf32>
    %120 = arith.mulf %116, %116 : vector<8x128xf32>
    %cst_75 = arith.constant dense<0.000000e+00> : vector<8xf32>
    %121 = vector.multi_reduction <add>, %120, %cst_75 [1] : vector<8x128xf32> to vector<8xf32>
    %122 = vector.shape_cast %121 : vector<8xf32> to vector<8x1xf32>
    %123 = arith.addf %119, %122 : vector<8x1xf32>
    %cst_76 = arith.constant 3.906250e-03 : f32
    %124 = vector.broadcast %cst_76 : f32 to vector<8x1xf32>
    %125 = arith.mulf %123, %124 : vector<8x1xf32>
    %cst_77 = arith.constant 9.99999974E-6 : f32
    %126 = vector.broadcast %cst_77 : f32 to vector<8x1xf32>
    %127 = arith.addf %125, %126 : vector<8x1xf32>
    %128 = math.rsqrt %127 : vector<8x1xf32>
    %129 = vector.broadcast %128 : vector<8x1xf32> to vector<8x128xf32>
    %130 = arith.mulf %114, %129 : vector<8x128xf32>
    %131 = vector.broadcast %0 : vector<1x128xf32> to vector<8x128xf32>
    %132 = arith.mulf %130, %131 : vector<8x128xf32>
    %133 = vector.broadcast %2 : vector<1x128xf32> to vector<8x128xf32>
    %134 = arith.addf %132, %133 : vector<8x128xf32>
    %135 = vector.broadcast %128 : vector<8x1xf32> to vector<8x128xf32>
    %136 = arith.mulf %116, %135 : vector<8x128xf32>
    %137 = vector.broadcast %1 : vector<1x128xf32> to vector<8x128xf32>
    %138 = arith.mulf %136, %137 : vector<8x128xf32>
    %139 = vector.broadcast %3 : vector<1x128xf32> to vector<8x128xf32>
    %140 = arith.addf %138, %139 : vector<8x128xf32>
    %c0_78 = arith.constant 0 : index
    %c0_79 = arith.constant 0 : index
    %c0_80 = arith.constant 0 : index
    %141 = vector.load %arg4[%c0_78, %c0_79, %c0_80] : memref<2x128x128xf32, #tpu.memory_space<vmem>>, vector<1x128x128xf32>
    %142 = vector.shape_cast %141 : vector<1x128x128xf32> to vector<128x128xf32>
    %cst_81 = arith.constant dense<0.000000e+00> : vector<8x128xf32>
    %143 = tpu.matmul %134, %142, %cst_81 {dimension_numbers = #tpu.dot_dimension_numbers<[1], [0], [0], [1], [0, 0, 1, 1], [], []>} : vector<8x128xf32>, vector<128x128xf32>, vector<8x128xf32> -> vector<8x128xf32>
    %c1_82 = arith.constant 1 : index
    %c0_83 = arith.constant 0 : index
    %c0_84 = arith.constant 0 : index
    %144 = vector.load %arg4[%c1_82, %c0_83, %c0_84] : memref<2x128x128xf32, #tpu.memory_space<vmem>>, vector<1x128x128xf32>
    %145 = vector.shape_cast %144 : vector<1x128x128xf32> to vector<128x128xf32>
    %cst_85 = arith.constant dense<0.000000e+00> : vector<8x128xf32>
    %146 = tpu.matmul %140, %145, %cst_85 {dimension_numbers = #tpu.dot_dimension_numbers<[1], [0], [0], [1], [0, 0, 1, 1], [], []>} : vector<8x128xf32>, vector<128x128xf32>, vector<8x128xf32> -> vector<8x128xf32>
    %147 = arith.addf %143, %146 : vector<8x128xf32>
    %c0_86 = arith.constant 0 : index
    %c2_87 = arith.constant 2 : index
    %c0_88 = arith.constant 0 : index
    %c0_89 = arith.constant 0 : index
    %148 = vector.load %arg5[%c0_86, %c2_87, %c0_88, %c0_89] : memref<1x8x8x128xf32, #tpu.memory_space<vmem>>, vector<1x1x8x128xf32>
    %149 = vector.shape_cast %148 : vector<1x1x8x128xf32> to vector<8x128xf32>
    %150 = vector.shape_cast %147 : vector<8x128xf32> to vector<1x1x8x128xf32>
    tpu.vector_store %arg5[%c0_86, %c2_87, %c0_88, %c0_89], %150 {strides = array<i32>} : memref<1x8x8x128xf32, #tpu.memory_space<vmem>>, vector<1x1x8x128xf32>,
    %c0_90 = arith.constant 0 : index
    %c3_91 = arith.constant 3 : index
    %c0_92 = arith.constant 0 : index
    %c0_93 = arith.constant 0 : index
    %c0_94 = arith.constant 0 : index
    %151 = vector.load %arg2[%c0_90, %c3_91, %c0_92, %c0_93, %c0_94] : memref<1x8x2x8x128xf32, #tpu.memory_space<vmem>>, vector<1x1x1x8x128xf32>
    %152 = vector.shape_cast %151 : vector<1x1x1x8x128xf32> to vector<8x128xf32>
    %c0_95 = arith.constant 0 : index
    %c3_96 = arith.constant 3 : index
    %c1_97 = arith.constant 1 : index
    %c0_98 = arith.constant 0 : index
    %c0_99 = arith.constant 0 : index
    %153 = vector.load %arg2[%c0_95, %c3_96, %c1_97, %c0_98, %c0_99] : memref<1x8x2x8x128xf32, #tpu.memory_space<vmem>>, vector<1x1x1x8x128xf32>
    %154 = vector.shape_cast %153 : vector<1x1x1x8x128xf32> to vector<8x128xf32>
    %cst_100 = arith.constant dense<0.000000e+00> : vector<8xf32>
    %155 = vector.multi_reduction <add>, %152, %cst_100 [1] : vector<8x128xf32> to vector<8xf32>
    %156 = vector.shape_cast %155 : vector<8xf32> to vector<8x1xf32>
    %cst_101 = arith.constant dense<0.000000e+00> : vector<8xf32>
    %157 = vector.multi_reduction <add>, %154, %cst_101 [1] : vector<8x128xf32> to vector<8xf32>
    %158 = vector.shape_cast %157 : vector<8xf32> to vector<8x1xf32>
    %159 = arith.addf %156, %158 : vector<8x1xf32>
    %cst_102 = arith.constant 3.906250e-03 : f32
    %160 = vector.broadcast %cst_102 : f32 to vector<8x1xf32>
    %161 = arith.mulf %159, %160 : vector<8x1xf32>
    %162 = vector.broadcast %161 : vector<8x1xf32> to vector<8x128xf32>
    %163 = arith.subf %152, %162 : vector<8x128xf32>
    %164 = vector.broadcast %161 : vector<8x1xf32> to vector<8x128xf32>
    %165 = arith.subf %154, %164 : vector<8x128xf32>
    %166 = arith.mulf %163, %163 : vector<8x128xf32>
    %cst_103 = arith.constant dense<0.000000e+00> : vector<8xf32>
    %167 = vector.multi_reduction <add>, %166, %cst_103 [1] : vector<8x128xf32> to vector<8xf32>
    %168 = vector.shape_cast %167 : vector<8xf32> to vector<8x1xf32>
    %169 = arith.mulf %165, %165 : vector<8x128xf32>
    %cst_104 = arith.constant dense<0.000000e+00> : vector<8xf32>
    %170 = vector.multi_reduction <add>, %169, %cst_104 [1] : vector<8x128xf32> to vector<8xf32>
    %171 = vector.shape_cast %170 : vector<8xf32> to vector<8x1xf32>
    %172 = arith.addf %168, %171 : vector<8x1xf32>
    %cst_105 = arith.constant 3.906250e-03 : f32
    %173 = vector.broadcast %cst_105 : f32 to vector<8x1xf32>
    %174 = arith.mulf %172, %173 : vector<8x1xf32>
    %cst_106 = arith.constant 9.99999974E-6 : f32
    %175 = vector.broadcast %cst_106 : f32 to vector<8x1xf32>
    %176 = arith.addf %174, %175 : vector<8x1xf32>
    %177 = math.rsqrt %176 : vector<8x1xf32>
    %178 = vector.broadcast %177 : vector<8x1xf32> to vector<8x128xf32>
    %179 = arith.mulf %163, %178 : vector<8x128xf32>
    %180 = vector.broadcast %0 : vector<1x128xf32> to vector<8x128xf32>
    %181 = arith.mulf %179, %180 : vector<8x128xf32>
    %182 = vector.broadcast %2 : vector<1x128xf32> to vector<8x128xf32>
    %183 = arith.addf %181, %182 : vector<8x128xf32>
    %184 = vector.broadcast %177 : vector<8x1xf32> to vector<8x128xf32>
    %185 = arith.mulf %165, %184 : vector<8x128xf32>
    %186 = vector.broadcast %1 : vector<1x128xf32> to vector<8x128xf32>
    %187 = arith.mulf %185, %186 : vector<8x128xf32>
    %188 = vector.broadcast %3 : vector<1x128xf32> to vector<8x128xf32>
    %189 = arith.addf %187, %188 : vector<8x128xf32>
    %c0_107 = arith.constant 0 : index
    %c0_108 = arith.constant 0 : index
    %c0_109 = arith.constant 0 : index
    %190 = vector.load %arg4[%c0_107, %c0_108, %c0_109] : memref<2x128x128xf32, #tpu.memory_space<vmem>>, vector<1x128x128xf32>
    %191 = vector.shape_cast %190 : vector<1x128x128xf32> to vector<128x128xf32>
    %cst_110 = arith.constant dense<0.000000e+00> : vector<8x128xf32>
    %192 = tpu.matmul %183, %191, %cst_110 {dimension_numbers = #tpu.dot_dimension_numbers<[1], [0], [0], [1], [0, 0, 1, 1], [], []>} : vector<8x128xf32>, vector<128x128xf32>, vector<8x128xf32> -> vector<8x128xf32>
    %c1_111 = arith.constant 1 : index
    %c0_112 = arith.constant 0 : index
    %c0_113 = arith.constant 0 : index
    %193 = vector.load %arg4[%c1_111, %c0_112, %c0_113] : memref<2x128x128xf32, #tpu.memory_space<vmem>>, vector<1x128x128xf32>
    %194 = vector.shape_cast %193 : vector<1x128x128xf32> to vector<128x128xf32>
    %cst_114 = arith.constant dense<0.000000e+00> : vector<8x128xf32>
    %195 = tpu.matmul %189, %194, %cst_114 {dimension_numbers = #tpu.dot_dimension_numbers<[1], [0], [0], [1], [0, 0, 1, 1], [], []>} : vector<8x128xf32>, vector<128x128xf32>, vector<8x128xf32> -> vector<8x128xf32>
    %196 = arith.addf %192, %195 : vector<8x128xf32>
    %c0_115 = arith.constant 0 : index
    %c3_116 = arith.constant 3 : index
    %c0_117 = arith.constant 0 : index
    %c0_118 = arith.constant 0 : index
    %197 = vector.load %arg5[%c0_115, %c3_116, %c0_117, %c0_118] : memref<1x8x8x128xf32, #tpu.memory_space<vmem>>, vector<1x1x8x128xf32>
    %198 = vector.shape_cast %197 : vector<1x1x8x128xf32> to vector<8x128xf32>
    %199 = vector.shape_cast %196 : vector<8x128xf32> to vector<1x1x8x128xf32>
    tpu.vector_store %arg5[%c0_115, %c3_116, %c0_117, %c0_118], %199 {strides = array<i32>} : memref<1x8x8x128xf32, #tpu.memory_space<vmem>>, vector<1x1x8x128xf32>,
    %c0_119 = arith.constant 0 : index
    %c4 = arith.constant 4 : index
    %c0_120 = arith.constant 0 : index
    %c0_121 = arith.constant 0 : index
    %c0_122 = arith.constant 0 : index
    %200 = vector.load %arg2[%c0_119, %c4, %c0_120, %c0_121, %c0_122] : memref<1x8x2x8x128xf32, #tpu.memory_space<vmem>>, vector<1x1x1x8x128xf32>
    %201 = vector.shape_cast %200 : vector<1x1x1x8x128xf32> to vector<8x128xf32>
    %c0_123 = arith.constant 0 : index
    %c4_124 = arith.constant 4 : index
    %c1_125 = arith.constant 1 : index
    %c0_126 = arith.constant 0 : index
    %c0_127 = arith.constant 0 : index
    %202 = vector.load %arg2[%c0_123, %c4_124, %c1_125, %c0_126, %c0_127] : memref<1x8x2x8x128xf32, #tpu.memory_space<vmem>>, vector<1x1x1x8x128xf32>
    %203 = vector.shape_cast %202 : vector<1x1x1x8x128xf32> to vector<8x128xf32>
    %cst_128 = arith.constant dense<0.000000e+00> : vector<8xf32>
    %204 = vector.multi_reduction <add>, %201, %cst_128 [1] : vector<8x128xf32> to vector<8xf32>
    %205 = vector.shape_cast %204 : vector<8xf32> to vector<8x1xf32>
    %cst_129 = arith.constant dense<0.000000e+00> : vector<8xf32>
    %206 = vector.multi_reduction <add>, %203, %cst_129 [1] : vector<8x128xf32> to vector<8xf32>
    %207 = vector.shape_cast %206 : vector<8xf32> to vector<8x1xf32>
    %208 = arith.addf %205, %207 : vector<8x1xf32>
    %cst_130 = arith.constant 3.906250e-03 : f32
    %209 = vector.broadcast %cst_130 : f32 to vector<8x1xf32>
    %210 = arith.mulf %208, %209 : vector<8x1xf32>
    %211 = vector.broadcast %210 : vector<8x1xf32> to vector<8x128xf32>
    %212 = arith.subf %201, %211 : vector<8x128xf32>
    %213 = vector.broadcast %210 : vector<8x1xf32> to vector<8x128xf32>
    %214 = arith.subf %203, %213 : vector<8x128xf32>
    %215 = arith.mulf %212, %212 : vector<8x128xf32>
    %cst_131 = arith.constant dense<0.000000e+00> : vector<8xf32>
    %216 = vector.multi_reduction <add>, %215, %cst_131 [1] : vector<8x128xf32> to vector<8xf32>
    %217 = vector.shape_cast %216 : vector<8xf32> to vector<8x1xf32>
    %218 = arith.mulf %214, %214 : vector<8x128xf32>
    %cst_132 = arith.constant dense<0.000000e+00> : vector<8xf32>
    %219 = vector.multi_reduction <add>, %218, %cst_132 [1] : vector<8x128xf32> to vector<8xf32>
    %220 = vector.shape_cast %219 : vector<8xf32> to vector<8x1xf32>
    %221 = arith.addf %217, %220 : vector<8x1xf32>
    %cst_133 = arith.constant 3.906250e-03 : f32
    %222 = vector.broadcast %cst_133 : f32 to vector<8x1xf32>
    %223 = arith.mulf %221, %222 : vector<8x1xf32>
    %cst_134 = arith.constant 9.99999974E-6 : f32
    %224 = vector.broadcast %cst_134 : f32 to vector<8x1xf32>
    %225 = arith.addf %223, %224 : vector<8x1xf32>
    %226 = math.rsqrt %225 : vector<8x1xf32>
    %227 = vector.broadcast %226 : vector<8x1xf32> to vector<8x128xf32>
    %228 = arith.mulf %212, %227 : vector<8x128xf32>
    %229 = vector.broadcast %0 : vector<1x128xf32> to vector<8x128xf32>
    %230 = arith.mulf %228, %229 : vector<8x128xf32>
    %231 = vector.broadcast %2 : vector<1x128xf32> to vector<8x128xf32>
    %232 = arith.addf %230, %231 : vector<8x128xf32>
    %233 = vector.broadcast %226 : vector<8x1xf32> to vector<8x128xf32>
    %234 = arith.mulf %214, %233 : vector<8x128xf32>
    %235 = vector.broadcast %1 : vector<1x128xf32> to vector<8x128xf32>
    %236 = arith.mulf %234, %235 : vector<8x128xf32>
    %237 = vector.broadcast %3 : vector<1x128xf32> to vector<8x128xf32>
    %238 = arith.addf %236, %237 : vector<8x128xf32>
    %c0_135 = arith.constant 0 : index
    %c0_136 = arith.constant 0 : index
    %c0_137 = arith.constant 0 : index
    %239 = vector.load %arg4[%c0_135, %c0_136, %c0_137] : memref<2x128x128xf32, #tpu.memory_space<vmem>>, vector<1x128x128xf32>
    %240 = vector.shape_cast %239 : vector<1x128x128xf32> to vector<128x128xf32>
    %cst_138 = arith.constant dense<0.000000e+00> : vector<8x128xf32>
    %241 = tpu.matmul %232, %240, %cst_138 {dimension_numbers = #tpu.dot_dimension_numbers<[1], [0], [0], [1], [0, 0, 1, 1], [], []>} : vector<8x128xf32>, vector<128x128xf32>, vector<8x128xf32> -> vector<8x128xf32>
    %c1_139 = arith.constant 1 : index
    %c0_140 = arith.constant 0 : index
    %c0_141 = arith.constant 0 : index
    %242 = vector.load %arg4[%c1_139, %c0_140, %c0_141] : memref<2x128x128xf32, #tpu.memory_space<vmem>>, vector<1x128x128xf32>
    %243 = vector.shape_cast %242 : vector<1x128x128xf32> to vector<128x128xf32>
    %cst_142 = arith.constant dense<0.000000e+00> : vector<8x128xf32>
    %244 = tpu.matmul %238, %243, %cst_142 {dimension_numbers = #tpu.dot_dimension_numbers<[1], [0], [0], [1], [0, 0, 1, 1], [], []>} : vector<8x128xf32>, vector<128x128xf32>, vector<8x128xf32> -> vector<8x128xf32>
    %245 = arith.addf %241, %244 : vector<8x128xf32>
    %c0_143 = arith.constant 0 : index
    %c4_144 = arith.constant 4 : index
    %c0_145 = arith.constant 0 : index
    %c0_146 = arith.constant 0 : index
    %246 = vector.load %arg5[%c0_143, %c4_144, %c0_145, %c0_146] : memref<1x8x8x128xf32, #tpu.memory_space<vmem>>, vector<1x1x8x128xf32>
    %247 = vector.shape_cast %246 : vector<1x1x8x128xf32> to vector<8x128xf32>
    %248 = vector.shape_cast %245 : vector<8x128xf32> to vector<1x1x8x128xf32>
    tpu.vector_store %arg5[%c0_143, %c4_144, %c0_145, %c0_146], %248 {strides = array<i32>} : memref<1x8x8x128xf32, #tpu.memory_space<vmem>>, vector<1x1x8x128xf32>,
    %c0_147 = arith.constant 0 : index
    %c5 = arith.constant 5 : index
    %c0_148 = arith.constant 0 : index
    %c0_149 = arith.constant 0 : index
    %c0_150 = arith.constant 0 : index
    %249 = vector.load %arg2[%c0_147, %c5, %c0_148, %c0_149, %c0_150] : memref<1x8x2x8x128xf32, #tpu.memory_space<vmem>>, vector<1x1x1x8x128xf32>
    %250 = vector.shape_cast %249 : vector<1x1x1x8x128xf32> to vector<8x128xf32>
    %c0_151 = arith.constant 0 : index
    %c5_152 = arith.constant 5 : index
    %c1_153 = arith.constant 1 : index
    %c0_154 = arith.constant 0 : index
    %c0_155 = arith.constant 0 : index
    %251 = vector.load %arg2[%c0_151, %c5_152, %c1_153, %c0_154, %c0_155] : memref<1x8x2x8x128xf32, #tpu.memory_space<vmem>>, vector<1x1x1x8x128xf32>
    %252 = vector.shape_cast %251 : vector<1x1x1x8x128xf32> to vector<8x128xf32>
    %cst_156 = arith.constant dense<0.000000e+00> : vector<8xf32>
    %253 = vector.multi_reduction <add>, %250, %cst_156 [1] : vector<8x128xf32> to vector<8xf32>
    %254 = vector.shape_cast %253 : vector<8xf32> to vector<8x1xf32>
    %cst_157 = arith.constant dense<0.000000e+00> : vector<8xf32>
    %255 = vector.multi_reduction <add>, %252, %cst_157 [1] : vector<8x128xf32> to vector<8xf32>
    %256 = vector.shape_cast %255 : vector<8xf32> to vector<8x1xf32>
    %257 = arith.addf %254, %256 : vector<8x1xf32>
    %cst_158 = arith.constant 3.906250e-03 : f32
    %258 = vector.broadcast %cst_158 : f32 to vector<8x1xf32>
    %259 = arith.mulf %257, %258 : vector<8x1xf32>
    %260 = vector.broadcast %259 : vector<8x1xf32> to vector<8x128xf32>
    %261 = arith.subf %250, %260 : vector<8x128xf32>
    %262 = vector.broadcast %259 : vector<8x1xf32> to vector<8x128xf32>
    %263 = arith.subf %252, %262 : vector<8x128xf32>
    %264 = arith.mulf %261, %261 : vector<8x128xf32>
    %cst_159 = arith.constant dense<0.000000e+00> : vector<8xf32>
    %265 = vector.multi_reduction <add>, %264, %cst_159 [1] : vector<8x128xf32> to vector<8xf32>
    %266 = vector.shape_cast %265 : vector<8xf32> to vector<8x1xf32>
    %267 = arith.mulf %263, %263 : vector<8x128xf32>
    %cst_160 = arith.constant dense<0.000000e+00> : vector<8xf32>
    %268 = vector.multi_reduction <add>, %267, %cst_160 [1] : vector<8x128xf32> to vector<8xf32>
    %269 = vector.shape_cast %268 : vector<8xf32> to vector<8x1xf32>
    %270 = arith.addf %266, %269 : vector<8x1xf32>
    %cst_161 = arith.constant 3.906250e-03 : f32
    %271 = vector.broadcast %cst_161 : f32 to vector<8x1xf32>
    %272 = arith.mulf %270, %271 : vector<8x1xf32>
    %cst_162 = arith.constant 9.99999974E-6 : f32
    %273 = vector.broadcast %cst_162 : f32 to vector<8x1xf32>
    %274 = arith.addf %272, %273 : vector<8x1xf32>
    %275 = math.rsqrt %274 : vector<8x1xf32>
    %276 = vector.broadcast %275 : vector<8x1xf32> to vector<8x128xf32>
    %277 = arith.mulf %261, %276 : vector<8x128xf32>
    %278 = vector.broadcast %0 : vector<1x128xf32> to vector<8x128xf32>
    %279 = arith.mulf %277, %278 : vector<8x128xf32>
    %280 = vector.broadcast %2 : vector<1x128xf32> to vector<8x128xf32>
    %281 = arith.addf %279, %280 : vector<8x128xf32>
    %282 = vector.broadcast %275 : vector<8x1xf32> to vector<8x128xf32>
    %283 = arith.mulf %263, %282 : vector<8x128xf32>
    %284 = vector.broadcast %1 : vector<1x128xf32> to vector<8x128xf32>
    %285 = arith.mulf %283, %284 : vector<8x128xf32>
    %286 = vector.broadcast %3 : vector<1x128xf32> to vector<8x128xf32>
    %287 = arith.addf %285, %286 : vector<8x128xf32>
    %c0_163 = arith.constant 0 : index
    %c0_164 = arith.constant 0 : index
    %c0_165 = arith.constant 0 : index
    %288 = vector.load %arg4[%c0_163, %c0_164, %c0_165] : memref<2x128x128xf32, #tpu.memory_space<vmem>>, vector<1x128x128xf32>
    %289 = vector.shape_cast %288 : vector<1x128x128xf32> to vector<128x128xf32>
    %cst_166 = arith.constant dense<0.000000e+00> : vector<8x128xf32>
    %290 = tpu.matmul %281, %289, %cst_166 {dimension_numbers = #tpu.dot_dimension_numbers<[1], [0], [0], [1], [0, 0, 1, 1], [], []>} : vector<8x128xf32>, vector<128x128xf32>, vector<8x128xf32> -> vector<8x128xf32>
    %c1_167 = arith.constant 1 : index
    %c0_168 = arith.constant 0 : index
    %c0_169 = arith.constant 0 : index
    %291 = vector.load %arg4[%c1_167, %c0_168, %c0_169] : memref<2x128x128xf32, #tpu.memory_space<vmem>>, vector<1x128x128xf32>
    %292 = vector.shape_cast %291 : vector<1x128x128xf32> to vector<128x128xf32>
    %cst_170 = arith.constant dense<0.000000e+00> : vector<8x128xf32>
    %293 = tpu.matmul %287, %292, %cst_170 {dimension_numbers = #tpu.dot_dimension_numbers<[1], [0], [0], [1], [0, 0, 1, 1], [], []>} : vector<8x128xf32>, vector<128x128xf32>, vector<8x128xf32> -> vector<8x128xf32>
    %294 = arith.addf %290, %293 : vector<8x128xf32>
    %c0_171 = arith.constant 0 : index
    %c5_172 = arith.constant 5 : index
    %c0_173 = arith.constant 0 : index
    %c0_174 = arith.constant 0 : index
    %295 = vector.load %arg5[%c0_171, %c5_172, %c0_173, %c0_174] : memref<1x8x8x128xf32, #tpu.memory_space<vmem>>, vector<1x1x8x128xf32>
    %296 = vector.shape_cast %295 : vector<1x1x8x128xf32> to vector<8x128xf32>
    %297 = vector.shape_cast %294 : vector<8x128xf32> to vector<1x1x8x128xf32>
    tpu.vector_store %arg5[%c0_171, %c5_172, %c0_173, %c0_174], %297 {strides = array<i32>} : memref<1x8x8x128xf32, #tpu.memory_space<vmem>>, vector<1x1x8x128xf32>,
    %c0_175 = arith.constant 0 : index
    %c6 = arith.constant 6 : index
    %c0_176 = arith.constant 0 : index
    %c0_177 = arith.constant 0 : index
    %c0_178 = arith.constant 0 : index
    %298 = vector.load %arg2[%c0_175, %c6, %c0_176, %c0_177, %c0_178] : memref<1x8x2x8x128xf32, #tpu.memory_space<vmem>>, vector<1x1x1x8x128xf32>
    %299 = vector.shape_cast %298 : vector<1x1x1x8x128xf32> to vector<8x128xf32>
    %c0_179 = arith.constant 0 : index
    %c6_180 = arith.constant 6 : index
    %c1_181 = arith.constant 1 : index
    %c0_182 = arith.constant 0 : index
    %c0_183 = arith.constant 0 : index
    %300 = vector.load %arg2[%c0_179, %c6_180, %c1_181, %c0_182, %c0_183] : memref<1x8x2x8x128xf32, #tpu.memory_space<vmem>>, vector<1x1x1x8x128xf32>
    %301 = vector.shape_cast %300 : vector<1x1x1x8x128xf32> to vector<8x128xf32>
    %cst_184 = arith.constant dense<0.000000e+00> : vector<8xf32>
    %302 = vector.multi_reduction <add>, %299, %cst_184 [1] : vector<8x128xf32> to vector<8xf32>
    %303 = vector.shape_cast %302 : vector<8xf32> to vector<8x1xf32>
    %cst_185 = arith.constant dense<0.000000e+00> : vector<8xf32>
    %304 = vector.multi_reduction <add>, %301, %cst_185 [1] : vector<8x128xf32> to vector<8xf32>
    %305 = vector.shape_cast %304 : vector<8xf32> to vector<8x1xf32>
    %306 = arith.addf %303, %305 : vector<8x1xf32>
    %cst_186 = arith.constant 3.906250e-03 : f32
    %307 = vector.broadcast %cst_186 : f32 to vector<8x1xf32>
    %308 = arith.mulf %306, %307 : vector<8x1xf32>
    %309 = vector.broadcast %308 : vector<8x1xf32> to vector<8x128xf32>
    %310 = arith.subf %299, %309 : vector<8x128xf32>
    %311 = vector.broadcast %308 : vector<8x1xf32> to vector<8x128xf32>
    %312 = arith.subf %301, %311 : vector<8x128xf32>
    %313 = arith.mulf %310, %310 : vector<8x128xf32>
    %cst_187 = arith.constant dense<0.000000e+00> : vector<8xf32>
    %314 = vector.multi_reduction <add>, %313, %cst_187 [1] : vector<8x128xf32> to vector<8xf32>
    %315 = vector.shape_cast %314 : vector<8xf32> to vector<8x1xf32>
    %316 = arith.mulf %312, %312 : vector<8x128xf32>
    %cst_188 = arith.constant dense<0.000000e+00> : vector<8xf32>
    %317 = vector.multi_reduction <add>, %316, %cst_188 [1] : vector<8x128xf32> to vector<8xf32>
    %318 = vector.shape_cast %317 : vector<8xf32> to vector<8x1xf32>
    %319 = arith.addf %315, %318 : vector<8x1xf32>
    %cst_189 = arith.constant 3.906250e-03 : f32
    %320 = vector.broadcast %cst_189 : f32 to vector<8x1xf32>
    %321 = arith.mulf %319, %320 : vector<8x1xf32>
    %cst_190 = arith.constant 9.99999974E-6 : f32
    %322 = vector.broadcast %cst_190 : f32 to vector<8x1xf32>
    %323 = arith.addf %321, %322 : vector<8x1xf32>
    %324 = math.rsqrt %323 : vector<8x1xf32>
    %325 = vector.broadcast %324 : vector<8x1xf32> to vector<8x128xf32>
    %326 = arith.mulf %310, %325 : vector<8x128xf32>
    %327 = vector.broadcast %0 : vector<1x128xf32> to vector<8x128xf32>
    %328 = arith.mulf %326, %327 : vector<8x128xf32>
    %329 = vector.broadcast %2 : vector<1x128xf32> to vector<8x128xf32>
    %330 = arith.addf %328, %329 : vector<8x128xf32>
    %331 = vector.broadcast %324 : vector<8x1xf32> to vector<8x128xf32>
    %332 = arith.mulf %312, %331 : vector<8x128xf32>
    %333 = vector.broadcast %1 : vector<1x128xf32> to vector<8x128xf32>
    %334 = arith.mulf %332, %333 : vector<8x128xf32>
    %335 = vector.broadcast %3 : vector<1x128xf32> to vector<8x128xf32>
    %336 = arith.addf %334, %335 : vector<8x128xf32>
    %c0_191 = arith.constant 0 : index
    %c0_192 = arith.constant 0 : index
    %c0_193 = arith.constant 0 : index
    %337 = vector.load %arg4[%c0_191, %c0_192, %c0_193] : memref<2x128x128xf32, #tpu.memory_space<vmem>>, vector<1x128x128xf32>
    %338 = vector.shape_cast %337 : vector<1x128x128xf32> to vector<128x128xf32>
    %cst_194 = arith.constant dense<0.000000e+00> : vector<8x128xf32>
    %339 = tpu.matmul %330, %338, %cst_194 {dimension_numbers = #tpu.dot_dimension_numbers<[1], [0], [0], [1], [0, 0, 1, 1], [], []>} : vector<8x128xf32>, vector<128x128xf32>, vector<8x128xf32> -> vector<8x128xf32>
    %c1_195 = arith.constant 1 : index
    %c0_196 = arith.constant 0 : index
    %c0_197 = arith.constant 0 : index
    %340 = vector.load %arg4[%c1_195, %c0_196, %c0_197] : memref<2x128x128xf32, #tpu.memory_space<vmem>>, vector<1x128x128xf32>
    %341 = vector.shape_cast %340 : vector<1x128x128xf32> to vector<128x128xf32>
    %cst_198 = arith.constant dense<0.000000e+00> : vector<8x128xf32>
    %342 = tpu.matmul %336, %341, %cst_198 {dimension_numbers = #tpu.dot_dimension_numbers<[1], [0], [0], [1], [0, 0, 1, 1], [], []>} : vector<8x128xf32>, vector<128x128xf32>, vector<8x128xf32> -> vector<8x128xf32>
    %343 = arith.addf %339, %342 : vector<8x128xf32>
    %c0_199 = arith.constant 0 : index
    %c6_200 = arith.constant 6 : index
    %c0_201 = arith.constant 0 : index
    %c0_202 = arith.constant 0 : index
    %344 = vector.load %arg5[%c0_199, %c6_200, %c0_201, %c0_202] : memref<1x8x8x128xf32, #tpu.memory_space<vmem>>, vector<1x1x8x128xf32>
    %345 = vector.shape_cast %344 : vector<1x1x8x128xf32> to vector<8x128xf32>
    %346 = vector.shape_cast %343 : vector<8x128xf32> to vector<1x1x8x128xf32>
    tpu.vector_store %arg5[%c0_199, %c6_200, %c0_201, %c0_202], %346 {strides = array<i32>} : memref<1x8x8x128xf32, #tpu.memory_space<vmem>>, vector<1x1x8x128xf32>,
    %c0_203 = arith.constant 0 : index
    %c7 = arith.constant 7 : index
    %c0_204 = arith.constant 0 : index
    %c0_205 = arith.constant 0 : index
    %c0_206 = arith.constant 0 : index
    %347 = vector.load %arg2[%c0_203, %c7, %c0_204, %c0_205, %c0_206] : memref<1x8x2x8x128xf32, #tpu.memory_space<vmem>>, vector<1x1x1x8x128xf32>
    %348 = vector.shape_cast %347 : vector<1x1x1x8x128xf32> to vector<8x128xf32>
    %c0_207 = arith.constant 0 : index
    %c7_208 = arith.constant 7 : index
    %c1_209 = arith.constant 1 : index
    %c0_210 = arith.constant 0 : index
    %c0_211 = arith.constant 0 : index
    %349 = vector.load %arg2[%c0_207, %c7_208, %c1_209, %c0_210, %c0_211] : memref<1x8x2x8x128xf32, #tpu.memory_space<vmem>>, vector<1x1x1x8x128xf32>
    %350 = vector.shape_cast %349 : vector<1x1x1x8x128xf32> to vector<8x128xf32>
    %cst_212 = arith.constant dense<0.000000e+00> : vector<8xf32>
    %351 = vector.multi_reduction <add>, %348, %cst_212 [1] : vector<8x128xf32> to vector<8xf32>
    %352 = vector.shape_cast %351 : vector<8xf32> to vector<8x1xf32>
    %cst_213 = arith.constant dense<0.000000e+00> : vector<8xf32>
    %353 = vector.multi_reduction <add>, %350, %cst_213 [1] : vector<8x128xf32> to vector<8xf32>
    %354 = vector.shape_cast %353 : vector<8xf32> to vector<8x1xf32>
    %355 = arith.addf %352, %354 : vector<8x1xf32>
    %cst_214 = arith.constant 3.906250e-03 : f32
    %356 = vector.broadcast %cst_214 : f32 to vector<8x1xf32>
    %357 = arith.mulf %355, %356 : vector<8x1xf32>
    %358 = vector.broadcast %357 : vector<8x1xf32> to vector<8x128xf32>
    %359 = arith.subf %348, %358 : vector<8x128xf32>
    %360 = vector.broadcast %357 : vector<8x1xf32> to vector<8x128xf32>
    %361 = arith.subf %350, %360 : vector<8x128xf32>
    %362 = arith.mulf %359, %359 : vector<8x128xf32>
    %cst_215 = arith.constant dense<0.000000e+00> : vector<8xf32>
    %363 = vector.multi_reduction <add>, %362, %cst_215 [1] : vector<8x128xf32> to vector<8xf32>
    %364 = vector.shape_cast %363 : vector<8xf32> to vector<8x1xf32>
    %365 = arith.mulf %361, %361 : vector<8x128xf32>
    %cst_216 = arith.constant dense<0.000000e+00> : vector<8xf32>
    %366 = vector.multi_reduction <add>, %365, %cst_216 [1] : vector<8x128xf32> to vector<8xf32>
    %367 = vector.shape_cast %366 : vector<8xf32> to vector<8x1xf32>
    %368 = arith.addf %364, %367 : vector<8x1xf32>
    %cst_217 = arith.constant 3.906250e-03 : f32
    %369 = vector.broadcast %cst_217 : f32 to vector<8x1xf32>
    %370 = arith.mulf %368, %369 : vector<8x1xf32>
    %cst_218 = arith.constant 9.99999974E-6 : f32
    %371 = vector.broadcast %cst_218 : f32 to vector<8x1xf32>
    %372 = arith.addf %370, %371 : vector<8x1xf32>
    %373 = math.rsqrt %372 : vector<8x1xf32>
    %374 = vector.broadcast %373 : vector<8x1xf32> to vector<8x128xf32>
    %375 = arith.mulf %359, %374 : vector<8x128xf32>
    %376 = vector.broadcast %0 : vector<1x128xf32> to vector<8x128xf32>
    %377 = arith.mulf %375, %376 : vector<8x128xf32>
    %378 = vector.broadcast %2 : vector<1x128xf32> to vector<8x128xf32>
    %379 = arith.addf %377, %378 : vector<8x128xf32>
    %380 = vector.broadcast %373 : vector<8x1xf32> to vector<8x128xf32>
    %381 = arith.mulf %361, %380 : vector<8x128xf32>
    %382 = vector.broadcast %1 : vector<1x128xf32> to vector<8x128xf32>
    %383 = arith.mulf %381, %382 : vector<8x128xf32>
    %384 = vector.broadcast %3 : vector<1x128xf32> to vector<8x128xf32>
    %385 = arith.addf %383, %384 : vector<8x128xf32>
    %c0_219 = arith.constant 0 : index
    %c0_220 = arith.constant 0 : index
    %c0_221 = arith.constant 0 : index
    %386 = vector.load %arg4[%c0_219, %c0_220, %c0_221] : memref<2x128x128xf32, #tpu.memory_space<vmem>>, vector<1x128x128xf32>
    %387 = vector.shape_cast %386 : vector<1x128x128xf32> to vector<128x128xf32>
    %cst_222 = arith.constant dense<0.000000e+00> : vector<8x128xf32>
    %388 = tpu.matmul %379, %387, %cst_222 {dimension_numbers = #tpu.dot_dimension_numbers<[1], [0], [0], [1], [0, 0, 1, 1], [], []>} : vector<8x128xf32>, vector<128x128xf32>, vector<8x128xf32> -> vector<8x128xf32>
    %c1_223 = arith.constant 1 : index
    %c0_224 = arith.constant 0 : index
    %c0_225 = arith.constant 0 : index
    %389 = vector.load %arg4[%c1_223, %c0_224, %c0_225] : memref<2x128x128xf32, #tpu.memory_space<vmem>>, vector<1x128x128xf32>
    %390 = vector.shape_cast %389 : vector<1x128x128xf32> to vector<128x128xf32>
    %cst_226 = arith.constant dense<0.000000e+00> : vector<8x128xf32>
    %391 = tpu.matmul %385, %390, %cst_226 {dimension_numbers = #tpu.dot_dimension_numbers<[1], [0], [0], [1], [0, 0, 1, 1], [], []>} : vector<8x128xf32>, vector<128x128xf32>, vector<8x128xf32> -> vector<8x128xf32>
    %392 = arith.addf %388, %391 : vector<8x128xf32>
    %c0_227 = arith.constant 0 : index
    %c7_228 = arith.constant 7 : index
    %c0_229 = arith.constant 0 : index
    %c0_230 = arith.constant 0 : index
    %393 = vector.load %arg5[%c0_227, %c7_228, %c0_229, %c0_230] : memref<1x8x8x128xf32, #tpu.memory_space<vmem>>, vector<1x1x8x128xf32>
    %394 = vector.shape_cast %393 : vector<1x1x8x128xf32> to vector<8x128xf32>
    %395 = vector.shape_cast %392 : vector<8x128xf32> to vector<1x1x8x128xf32>
    tpu.vector_store %arg5[%c0_227, %c7_228, %c0_229, %c0_230], %395 {strides = array<i32>} : memref<1x8x8x128xf32, #tpu.memory_space<vmem>>, vector<1x1x8x128xf32>,
    return
  }
  func.func @transform_0(%arg0: i32, %arg1: i32) -> (i32, i32, i32, i32, i32) {
    %c0_i32 = arith.constant 0 : i32
    %c0_i32_0 = arith.constant 0 : i32
    %c0_i32_1 = arith.constant 0 : i32
    %c0_i32_2 = arith.constant 0 : i32
    return %arg0, %arg1, %c0_i32, %c0_i32_0, %c0_i32_1 : i32, i32, i32, i32, i32
  }
  func.func @transform_1(%arg0: i32, %arg1: i32) -> (i32, i32) {
    %c0_i32 = arith.constant 0 : i32
    %c0_i32_0 = arith.constant 0 : i32
    %c0_i32_1 = arith.constant 0 : i32
    return %c0_i32, %c0_i32_0 : i32, i32
  }
  func.func @transform_2(%arg0: i32, %arg1: i32) -> (i32, i32, i32) {
    %c0_i32 = arith.constant 0 : i32
    %c0_i32_0 = arith.constant 0 : i32
    %c0_i32_1 = arith.constant 0 : i32
    %c0_i32_2 = arith.constant 0 : i32
    return %c0_i32, %c0_i32_0, %c0_i32_1 : i32, i32, i32
  }
  func.func @transform_3(%arg0: i32, %arg1: i32) -> (i32, i32, i32, i32) {
    %c0_i32 = arith.constant 0 : i32
    %c0_i32_0 = arith.constant 0 : i32
    %c0_i32_1 = arith.constant 0 : i32
    return %arg0, %arg1, %c0_i32, %c0_i32_0 : i32, i32, i32, i32
  }
}

</mosaic_0001>

<bundles_post_ra>
// kernel: tpu_custom_call.1
= control target key start
LH: loop header
LB: loop body
LE: loop exit
PB: predicated region body
PF: predicated region fallthrough
CT: control target
= control target key end

     0   :  { %s2284_s0 = inlined_call_operand.hbm [shape: f32[2,8,2,8,128], index: 0, kind: input, shape index: {}]   ;;  %s2285_s1 = inlined_call_operand.hbm [shape: f32[4,128], index: 1, kind: input, shape index: {}]   ;;  %s2286_s2 = inlined_call_operand.hbm [shape: f32[2,128,128], index: 2, kind: input, shape index: {}]   ;;  %s2287_s3 = inlined_call_operand.hbm [shape: f32[2,8,8,128], index: 3, kind: output, shape index: {}]  }
   0x1   :  { %2306 = sst [smem:[#allocation23_spill]] %s2285_s1 }
   0x2   :  { %8 = vsyncpa [#allocation3], 0 }
   0x3   :  { %10 = vsyncpa [#allocation3 + $0x1], 0 }
   0x4   :  { %11 = vsyncpa [#allocation6], 0 }
   0x5   :  { %12 = vsyncpa [#allocation4], 0 }
   0x6   :  { %14 = vsyncpa [#allocation4 + $0x1], 0  ;;  %s1616_s12 = smov 0   ;;  %s1618_s13 = smov 0  }
   0x7   :  { %s1620_s14 = smov 0   ;;  %s1622_s15 = smov 0  }
   0x8   :  { %s1624_s16 = smov 0   ;;  %s1626_s17 = smov 0  }
   0x9 LB: > { %s1262_s18 = sadd.s32 4294967295, %s1588_s17   ;;  %s1263_s19 = sadd.s32 4294967294, %s1588_s17   ;;  %s1588_s17 = sphi %s1626_s17, %s20_s17   ;;  %s1584_s16 = sphi %s1624_s16, %s2345_s16   ;;  %s1580_s15 = sphi %s1622_s15, %s2344_s15   ;;  %s1576_s14 = sphi %s1620_s14, %s2343_s14   ;;  %s1572_s13 = sphi %s1618_s13, %s2342_s13   ;;  %s1568_s12 = sphi %s1616_s12, %s2341_s12  }
   0xa   : > { %s41_s20 = sadd.s32 1, %s1576_s14  ;;  %p48_p0 = scmp.ne.s32.totalorder %s1576_s14, %s1572_s13 }
   0xb   : > { %p49_p1 = scmp.eq.s32.totalorder %s1588_s17, 0  ;;  %p54_p2 = scmp.ne.s32.totalorder %s1572_s13, %s1568_s12 }
   0xc   : > { %p1654_p3 = scmp.eq.s32.totalorder %s1262_s18, 0  ;;  %p122_p4 = scmp.eq.s32.totalorder %s1262_s18, 1 }
   0xd   : > { %p1658_p5 = por %p49_p1, %p48_p0  ;;  %p128_p6 = scmp.eq.s32.totalorder %s1263_s19, 1 }
   0xe   : > { %p1664_p7 = por %p1654_p3, %p54_p2  ;;  %p1668_p8 = por %p122_p4, %p48_p0 }
   0xf   : > { %p1672_p9 = por %p128_p6, %p54_p2  ;;  %p1264_p10 = scmp.ge.s32.totalorder %s1588_s17, 1 }
  0x10   : > { %p135_p11 = scmp.lt.s32.totalorder %s1588_s17, 3  ;;  %s2312_s1 = sld [smem:[#allocation23_spill]] }
  0x11   : > { %s1590_s30 = smov [#allocation5]   ;;  %p1267_p13 = scmp.ge.s32.totalorder %s1588_s17, 2 }
  0x12   : > { %p1681_p12 = pnand %p1264_p10, %p135_p11  ;;  %s149_s4 = sshll.u32 %s1590_s30, 4  ;;  %s150_s4 = int_to_ptr.vmem [resolvable:$true] %s149_s4 }
  0x13   : > { %p1334_p1 = scmp.lt.s32.totalorder %s1588_s17, 2  ;;  %s158_s7 = sshll.u32 %s2286_s2, 4  ;;  %s159_s7 = int_to_ptr.hbm [resolvable:$true] %s158_s7 }
  0x14   : > { %p1317_p0 = pneg %p1681_p12  ;;  %s1591_s9 = smov [#allocation7]  }
  0x15   : > { %p1696_p4 = pnand %p1334_p1, %p1658_p5  ;;  %s160_s10 = sshll.u32 %s1591_s9, 4  ;;  %s161_s10 = int_to_ptr.vmem [resolvable:$true] %s160_s10 }
  0x16   : > { %s147_s28 = sshll.u32 %s2312_s1, 4  ;;  %p1318_p2 = pnand %p1317_p0, %p1654_p3  ;;  %s148_s28 = int_to_ptr.hbm [resolvable:$true] %s147_s28 }
  0x17   : > { %s1592_s11 = smov 128   ;;  %s1593_s18 = smov 8  }
  0x18   : > { %1320 = dma.hbm_to_vmem [thread:$0]  (!%p1318_p2), %s148_s28, 64, %s150_s4, [#allocation6]  }
  0x19   : > { %1323 = dma.hbm_to_vmem [thread:$0]  (!%p1318_p2), %s159_s7, 4096, %s161_s10, [#allocation6], %s1592_s11, %s1592_s11, %s1593_s18  }
  0x1a   : > { %s174_s19 = sand.u32 1, %s1576_s14   ;;  %s32_s26 = sadd.s32 1, %s1584_s16 }
  0x1b   : > { %s1268_s27 = sshll.u32 %s174_s19, 7  ;;  %p34_p6 = scmp.ge.s32.totalorder %s32_s26, 2 }
  0x1c   : > { %s1303_s22 = sshll.u32 %s1584_s16, 7  ;;  %s178_s30 = scalar_lea.vmem [#allocation2], %s1268_s27 }
  0x1d   : > { %s189_s5 = sshll.u32 %s178_s30, 4  ;;  %s2347_s26 = smov (%p34_p6, %s32_s26), 0  ;;  %s190_s5 = int_to_ptr.vmem [resolvable:$true] %s189_s5 }
  0x1e   : > { %s186_s28 = scalar_lea.hbm %s2284_s0, %s1303_s22  ;;  %s36_s4 = ssub.s32 %s1584_s16, %s2347_s26 }
  0x1f   : > { %s187_s7 = sshll.u32 %s186_s28, 4  ;;  %p39_p5 = scmp.eq.s32.totalorder %s36_s4, 0  ;;  %s188_s7 = int_to_ptr.hbm [resolvable:$true] %s187_s7 }
  0x20   : > { %s175_s10 = scalar_lea.sflag [#allocation3], %s174_s19  ;;  %201 = sbr.rel (%p1681_p12) target bundleno = 531 (0x213), region = 32 }
  0x21   : > { %1327 = dma.hbm_to_vmem [thread:$0]  (!%p1696_p4), %s188_s7, 2048, %s190_s5, %s175_s10, %s1592_s11, %s1592_s11, %s1593_s18  }
  0x22   : > { %s1715_s1 = scalar_select %p39_p5, %s1576_s14, %s41_s20  }
  0x25   : > { %s1720_s27 = sand.u32 1, %s1572_s13  }
  0x26   : > { %s1272_s22 = sshll.u32 %s1720_s27, 7  ;;  %s204_s30 = scalar_lea.sflag [#allocation3], %s1720_s27 }
  0x27   : > { %s1724_s6 = scalar_lea.vmem [#allocation2], %s1272_s22 }
  0x28   : > { %1555 = dma.done.wait (%p1664_p7), %s204_s30, 2048  }
  0x29   : > { %1557 = vsyncadd (%p1664_p7), %s204_s30, 4294965248 }
  0x2a   : > { %1559 = dma.done.wait (%p1654_p3), [#allocation6], 4160  }
  0x2b   : > { %1561 = vsyncadd (%p1654_p3), [#allocation6], 4294963136  ;;  %v1277_v0 = vld [vmem:[%s1724_s6 + $0x10] sm:$0xff]  ;;  %v247_v1 = vld [vmem:[%s1724_s6] sm:$0xff]  ;;  %s1275_s20 = sshll.u32 %s1720_s27, 6  ;;  %s1304_s23 = sshll.u32 %s1580_s15, 6 }
  0x2c   : > { %v1283_v2 = vld [vmem:[%s1724_s6 + $0x30] sm:$0xff]  ;;  %365 = vadd.xlane.f32.xlu0 %v1277_v0  ;;  %250 = vadd.xlane.f32.xlu1 %v247_v1  ;;  %v1278_v3 = vld [vmem:[%s1724_s6 + $0x18] sm:$0xff]  ;;  %v1276_v4 = vld [vmem:[%s1724_s6 + $0x8] sm:$0xff]  ;;  %s2235_s21 = scalar_lea.vmem [#allocation8], %s1275_s20  ;;  %s1152_s11 = scalar_lea.hbm %s2287_s3, %s1304_s23 }
  0x2d   : > { %587 = vadd.xlane.f32.xlu2 %v1283_v2  ;;  %v1284_v5 = vld [vmem:[%s1724_s6 + $0x38] sm:$0xff]  ;;  %v1280_v6 = vld [vmem:[%s1724_s6 + $0x20] sm:$0xff]  ;;  %v1281_v7 = vld [vmem:[%s1724_s6 + $0x28] sm:$0xff]  ;;  %s1153_s18 = sshll.u32 %s2235_s21, 4  ;;  %s1155_s19 = sshll.u32 %s1152_s11, 4  ;;  %s1154_s18 = int_to_ptr.vmem [resolvable:$true] %s1153_s18  ;;  %s1156_s19 = int_to_ptr.hbm [resolvable:$true] %s1155_s19 }
  0x2e   : > { %v1743_v8 = vld [vmem:[%s1724_s6 + $0x50] sm:$0xff]  ;;  %v1747_v9 = vld [vmem:[%s1724_s6 + $0x58] sm:$0xff]  ;;  %v1750_v10 = vld [vmem:[%s1724_s6 + $0x40] sm:$0xff]  ;;  %s1139_s5 = scalar_lea.sflag [#allocation4], %s1720_s27  ;;  %s1516_s9 = sshra.s32 %s1156_s19, 4  ;;  %s1517_s9 = int_to_ptr.hbm [resolvable:$true] %s1516_s9 }
  0x2f   : > { %v1753_v11 = vld [vmem:[%s1724_s6 + $0x48] sm:$0xff]  ;;  %v1759_v12 = vld [vmem:[%s1724_s6 + $0x70] sm:$0xff]  ;;  %v1762_v13 = vld [vmem:[%s1724_s6 + $0x78] sm:$0xff]  ;;  %s1518_s15 = scalar_lea.hbm %s1517_s9, 64  ;;  %s1522_s7 = scalar_lea.hbm %s2287_s3, 128 }
  0x30   : > { %v1765_v14 = vld [vmem:[%s1724_s6 + $0x60] sm:$0xff]  ;;  %v1771_v15 = vld [vmem:[%s1724_s6 + $0x68] sm:$0xff]  ;;  %v1806_v53 = vld [vmem:[#allocation7 + $0xf0] sm:$0xff]  ;;  %p1519_p3 = scmp.ne.s32.totalorder %s1517_s9, %s1518_s15  ;;  %p1523_p11 = scmp.lt.s32.totalorder %s1517_s9, %s2287_s3 }
  0x31   : > { %v1802_v51 = vld [vmem:[#allocation7 + $0xf8] sm:$0xff]  ;;  %v1809_v55 = vld [vmem:[#allocation7 + $0x70] sm:$0xff]  ;;  %v1812_v57 = vld [vmem:[#allocation7 + $0xe8] sm:$0xff]  ;;  %p1524_p12 = scmp.lt.s32.totalorder %s1522_s7, %s1518_s15 }
  0x32   : > { %v1804_v52 = vld [vmem:[#allocation7 + $0x78] sm:$0xff]  ;;  %430 = vmatpush.msra.mxu2 %v1802_v51  ;;  %320 = vmatpush.msra.mxu0 %v1802_v51  ;;  %v1816_v58 = vld [vmem:[#allocation7 + $0x68] sm:$0xff]  ;;  %v1827_v63 = vld [vmem:[#allocation7 + $0xe0] sm:$0xff]  ;;  %p1520_p7 = pnand %p1519_p3, %p1668_p8 }
  0x33   : > { %450 = vmatpush.msra.mxu3 %v1804_v52  ;;  %340 = vmatpush.msra.mxu1 %v1804_v52  ;;  %p1525_p0 = por %p1524_p12, %p1523_p11 }
  0x34   : > { %367 = vadd.xlane.f32.xlu0 %v1278_v3  ;;  %252 = vadd.xlane.f32.xlu1 %v1276_v4  ;;  %p1521_p10 = pneg %p1520_p7 }
  0x35   : > { %589 = vadd.xlane.f32.xlu2 %v1284_v5  ;;  %431 = vmatpush.msra.mxu2 %v1806_v53 }
  0x36   : > { %451 = vmatpush.msra.mxu3 %v1809_v55  ;;  %321 = vmatpush.msra.mxu0 %v1806_v53  ;;  %p1526_p1 = pnand %p1525_p0, %p1521_p10 }
  0x37   : > { %432 = vmatpush.msra.mxu2 %v1812_v57  ;;  %341 = vmatpush.msra.mxu1 %v1809_v55 }
  0x38   : > { %452 = vmatpush.msra.mxu3 %v1816_v58  ;;  %322 = vmatpush.msra.mxu0 %v1812_v57 }
  0x39   : > { %433 = vmatpush.msra.mxu2 %v1827_v63  ;;  %342 = vmatpush.msra.mxu1 %v1816_v58 }
  0x3a   : > { %323 = vmatpush.msra.mxu0 %v1827_v63 }
  0x3c   : > { %476 = vadd.xlane.f32.xlu0 %v1280_v6  ;;  %478 = vadd.xlane.f32.xlu1 %v1281_v7 }
  0x3d   : > { %809 = vadd.xlane.f32.xlu2 %v1743_v8 }
  0x44   : > { %811 = vadd.xlane.f32.xlu0 %v1747_v9  ;;  %698 = vadd.xlane.f32.xlu1 %v1750_v10 }
  0x45   : > { %700 = vadd.xlane.f32.xlu2 %v1753_v11 }
  0x4c   : > { %1031 = vadd.xlane.f32.xlu0 %v1759_v12  ;;  %1033 = vadd.xlane.f32.xlu1 %v1762_v13 }
  0x4d   : > { %920 = vadd.xlane.f32.xlu2 %v1765_v14 }
  0x54   : > { %922 = vadd.xlane.f32.xlu0 %v1771_v15 }
  0x9f   : > { %v366_v16 = vpop.xlane.xlu0 %365  ;;  %v251_v17 = vpop.xlane.xlu1 %250 }
  0xa0   : > { %v588_v18 = vpop.xlane.xlu2 %587 }
  0xa7   : > { %v368_v19 = vpop.xlane.xlu0 %367  ;;  %v253_v20 = vpop.xlane.xlu1 %252 }
  0xa8   : > { %v369_v21 = vadd.f32 %v368_v19, %v366_v16  ;;  %v254_v22 = vadd.f32 %v253_v20, %v251_v17  ;;  %v590_v23 = vpop.xlane.xlu2 %589  ;;  %v1854_v17 = vld [vmem:[#allocation7 + $0xd0] sm:$0xff]  ;;  %v1869_v20 = vld [vmem:[#allocation7 + $0x48] sm:$0xff] }
  0xa9   : > { %v591_v24 = vadd.f32 %v590_v23, %v588_v18  ;;  %v1877_v23 = vld [vmem:[#allocation7 + $0xc0] sm:$0xff] }
  0xaa   : > { %v370_v25 = vmul.f32 0.00390625, %v369_v21  ;;  %v255_v26 = vmul.f32 0.00390625, %v254_v22 }
  0xab   : > { %v592_v30 = vmul.f32 0.00390625, %v591_v24 }
  0xac   : > { %v1774_v27 = vsub.f32 %v1277_v0, %v370_v25  ;;  %v1776_v28 = vsub.f32 %v1278_v3, %v370_v25  ;;  %v1778_v29 = vsub.f32 %v247_v1, %v255_v26  ;;  %v1790_v40 = vsub.f32 %v1276_v4, %v255_v26  ;;  %v1835_v1 = vld [vmem:[#allocation7 + $0x60] sm:$0xff]  ;;  %v1839_v4 = vld [vmem:[#allocation7 + $0xd8] sm:$0xff] }
  0xad   : > { %v1786_v36 = vsub.f32 %v1283_v2, %v592_v30  ;;  %v1788_v39 = vsub.f32 %v1284_v5, %v592_v30  ;;  %453 = vmatpush.msra.mxu3 %v1835_v1  ;;  %434 = vmatpush.msra.mxu2 %v1839_v4  ;;  %v1881_v25 = vld [vmem:[#allocation7 + $0x40] sm:$0xff] }
  0xae   : > { %v376_v31 = vmul.f32 %v1776_v28, %v1776_v28  ;;  %v373_v32 = vmul.f32 %v1774_v27, %v1774_v27  ;;  %v258_v33 = vmul.f32 %v1778_v29, %v1778_v29  ;;  %v261_v44 = vmul.f32 %v1790_v40, %v1790_v40  ;;  %343 = vmatpush.msra.mxu1 %v1835_v1 }
  0xaf   : > { %v477_v34 = vpop.xlane.xlu0 %476  ;;  %v479_v35 = vpop.xlane.xlu1 %478  ;;  %v595_v42 = vmul.f32 %v1786_v36, %v1786_v36  ;;  %v598_v43 = vmul.f32 %v1788_v39, %v1788_v39  ;;  %435 = vmatpush.msra.mxu2 %v1854_v17  ;;  %324 = vmatpush.msra.mxu0 %v1839_v4 }
  0xb0   : > { %377 = vadd.xlane.f32.xlu2 %v376_v31  ;;  %374 = vadd.xlane.f32.xlu1 %v373_v32  ;;  %v810_v37 = vpop.xlane.xlu2 %809  ;;  %v480_v38 = vadd.f32 %v479_v35, %v477_v34  ;;  %v1890_v32 = vld [vmem:[#allocation7 + $0xb8] sm:$0xff]  ;;  %v1896_v35 = vld [vmem:[#allocation7 + $0xb0] sm:$0xff] }
  0xb1   : > { %259 = vadd.xlane.f32.xlu0 %v258_v33  ;;  %325 = vmatpush.msra.mxu0 %v1854_v17  ;;  %v1893_v33 = vld [vmem:[#allocation7 + $0x38] sm:$0xff] }
  0xb2   : > { %v481_v41 = vmul.f32 0.00390625, %v480_v38 }
  0xb4   : > { %v1798_v48 = vsub.f32 %v1280_v6, %v481_v41  ;;  %v1800_v49 = vsub.f32 %v1281_v7, %v481_v41  ;;  %v1911_v41 = vld [vmem:[#allocation7 + $0xa8] sm:$0xff] }
  0xb6   : > { %v487_v61 = vmul.f32 %v1800_v49, %v1800_v49  ;;  %v484_v62 = vmul.f32 %v1798_v48, %v1798_v48 }
  0xb7   : > { %v812_v45 = vpop.xlane.xlu0 %811  ;;  %v699_v46 = vpop.xlane.xlu1 %698 }
  0xb8   : > { %v813_v47 = vadd.f32 %v812_v45, %v810_v37  ;;  %596 = vadd.xlane.f32.xlu2 %v595_v42  ;;  %262 = vadd.xlane.f32.xlu1 %v261_v44  ;;  %v701_v50 = vpop.xlane.xlu2 %700  ;;  %v1919_v42 = vld [vmem:[#allocation7 + $0x28] sm:$0xff]  ;;  %v1929_v45 = vld [vmem:[#allocation7 + $0x20] sm:$0xff] }
  0xb9   : > { %599 = vadd.xlane.f32.xlu0 %v598_v43  ;;  %v702_v54 = vadd.f32 %v701_v50, %v699_v46  ;;  %v1923_v43 = vld [vmem:[#allocation7 + $0xa0] sm:$0xff]  ;;  %v1932_v46 = vld [vmem:[#allocation7 + $0x98] sm:$0xff] }
  0xba   : > { %v814_v56 = vmul.f32 0.00390625, %v813_v47  ;;  %v1935_v47 = vld [vmem:[#allocation7 + $0x18] sm:$0xff] }
  0xbb   : > { %v703_v60 = vmul.f32 0.00390625, %v702_v54  ;;  %2319 = vst [vmem:[#allocation16_spill] sm:$0xff] %v1935_v47  ;;  %v1945_v54 = vld [vmem:[#allocation7 + $0x10] sm:$0xff] }
  0xbc   : > { %v1820_v59 = vsub.f32 %v1743_v8, %v814_v56  ;;  %v1843_v5 = vsub.f32 %v1747_v9, %v814_v56  ;;  %v1848_v8 = vld [vmem:[#allocation7 + $0x58] sm:$0xff]  ;;  %v1857_v9 = vld [vmem:[#allocation7 + $0x50] sm:$0xff]  ;;  %2321 = vst [vmem:[#allocation18_spill] sm:$0xff] %v1945_v54  ;;  %v1950_v56 = vld [vmem:[#allocation7 + $0x88] sm:$0xff] }
  0xbd   : > { %v1846_v6 = vsub.f32 %v1750_v10, %v703_v60  ;;  %v1851_v16 = vsub.f32 %v1753_v11, %v703_v60  ;;  %454 = vmatpush.msra.mxu3 %v1848_v8  ;;  %v1861_v10 = vld [vmem:[#allocation7 + $0xc8] sm:$0xff]  ;;  %344 = vmatpush.msra.mxu1 %v1848_v8  ;;  %2322 = vst [vmem:[#allocation19_spill] sm:$0xff] %v1950_v56 }
  0xbe   : > { %v817_v0 = vmul.f32 %v1820_v59, %v1820_v59  ;;  %v820_v11 = vmul.f32 %v1843_v5, %v1843_v5  ;;  %436 = vmatpush.msra.mxu2 %v1861_v10  ;;  %326 = vmatpush.msra.mxu0 %v1861_v10  ;;  %v1953_v60 = vld [vmem:[#allocation7 + $0x8] sm:$0xff] }
  0xbf   : > { %v1032_v2 = vpop.xlane.xlu0 %1031  ;;  %v1034_v3 = vpop.xlane.xlu1 %1033  ;;  %2315 = vst [vmem:[#allocation12_spill] sm:$0xff] %v1846_v6  ;;  %v706_v19 = vmul.f32 %v1846_v6, %v1846_v6  ;;  %v709_v21 = vmul.f32 %v1851_v16, %v1851_v16  ;;  %455 = vmatpush.msra.mxu3 %v1857_v9  ;;  %345 = vmatpush.msra.mxu1 %v1857_v9 }
  0xc0   : > { %488 = vadd.xlane.f32.xlu2 %v487_v61  ;;  %485 = vadd.xlane.f32.xlu1 %v484_v62  ;;  %v1035_v7 = vadd.f32 %v1034_v3, %v1032_v2  ;;  %2316 = vst [vmem:[#allocation13_spill] sm:$0xff] %v1851_v16  ;;  %v921_v22 = vpop.xlane.xlu2 %920  ;;  %v1958_v61 = vld [vmem:[#allocation7 + $0x80] sm:$0xff] }
  0xc1   : > { %818 = vadd.xlane.f32.xlu0 %v817_v0  ;;  %456 = vmatpush.msra.mxu3 %v1869_v20  ;;  %2323 = vst [vmem:[#allocation20_spill] sm:$0xff] %v1953_v60  ;;  %v1961_v62 = vld [vmem:[#allocation7] sm:$0xff] }
  0xc2   : > { %v1036_v18 = vmul.f32 0.00390625, %v1035_v7  ;;  %437 = vmatpush.msra.mxu2 %v1877_v23  ;;  %346 = vmatpush.msra.mxu1 %v1869_v20  ;;  %2324 = vst [vmem:[#allocation21_spill] sm:$0xff] %v1958_v61 }
  0xc3   : > { %457 = vmatpush.msra.mxu3 %v1881_v25  ;;  %327 = vmatpush.msra.mxu0 %v1877_v23  ;;  %2325 = vst [vmem:[#allocation22_spill] sm:$0xff] %v1961_v62 }
  0xc4   : > { %v1885_v26 = vsub.f32 %v1759_v12, %v1036_v18  ;;  %v1888_v30 = vsub.f32 %v1762_v13, %v1036_v18  ;;  %438 = vmatpush.msra.mxu2 %v1890_v32  ;;  %v1900_v12 = vld [vmem:[#allocation7 + $0x30] sm:$0xff]  ;;  %347 = vmatpush.msra.mxu1 %v1881_v25 }
  0xc5   : > { %458 = vmatpush.msra.mxu3 %v1893_v33  ;;  %328 = vmatpush.msra.mxu0 %v1890_v32 }
  0xc6   : > { %v1042_v37 = vmul.f32 %v1888_v30, %v1888_v30  ;;  %v1039_v38 = vmul.f32 %v1885_v26, %v1885_v26  ;;  %439 = vmatpush.msra.mxu2 %v1896_v35  ;;  %348 = vmatpush.msra.mxu1 %v1893_v33 }
  0xc7   : > { %v923_v24 = vpop.xlane.xlu0 %922  ;;  %459 = vmatpush.msra.mxu3 %v1900_v12  ;;  %329 = vmatpush.msra.mxu0 %v1896_v35 }
  0xc8   : > { %821 = vadd.xlane.f32.xlu1 %v820_v11  ;;  %707 = vadd.xlane.f32.xlu2 %v706_v19  ;;  %v924_v31 = vadd.f32 %v923_v24, %v921_v22 }
  0xc9   : > { %710 = vadd.xlane.f32.xlu0 %v709_v21  ;;  %440 = vmatpush.msra.mxu2 %v1911_v41 }
  0xca   : > { %v925_v34 = vmul.f32 0.00390625, %v924_v31  ;;  %460 = vmatpush.msra.mxu3 %v1919_v42  ;;  %349 = vmatpush.msra.mxu1 %v1900_v12 }
  0xcb   : > { %441 = vmatpush.msra.mxu2 %v1923_v43  ;;  %330 = vmatpush.msra.mxu0 %v1911_v41 }
  0xcc   : > { %v1904_v13 = vsub.f32 %v1765_v14, %v925_v34  ;;  %v1927_v44 = vsub.f32 %v1771_v15, %v925_v34  ;;  %461 = vmatpush.msra.mxu3 %v1929_v45  ;;  %v1940_v15 = vld [vmem:[#allocation7 + $0x90] sm:$0xff]  ;;  %350 = vmatpush.msra.mxu1 %v1919_v42 }
  0xcd   : > { %2320 = vst [vmem:[#allocation17_spill] sm:$0xff] %v1940_v15  ;;  %442 = vmatpush.msra.mxu2 %v1932_v46  ;;  %331 = vmatpush.msra.mxu0 %v1923_v43 }
  0xce   : > { %2317 = vst [vmem:[#allocation14_spill] sm:$0xff] %v1904_v13  ;;  %v928_v14 = vmul.f32 %v1904_v13, %v1904_v13  ;;  %v931_v50 = vmul.f32 %v1927_v44, %v1927_v44  ;;  %462 = vmatpush.msra.mxu3 %v1935_v47  ;;  %351 = vmatpush.msra.mxu1 %v1929_v45 }
  0xcf   : > { %2318 = vst [vmem:[#allocation15_spill] sm:$0xff] %v1927_v44  ;;  %443 = vmatpush.msra.mxu2 %v1940_v15  ;;  %332 = vmatpush.msra.mxu0 %v1932_v46 }
  0xd0   : > { %1043 = vadd.xlane.f32.xlu2 %v1042_v37  ;;  %1040 = vadd.xlane.f32.xlu1 %v1039_v38 }
  0xd1   : > { %929 = vadd.xlane.f32.xlu0 %v928_v14  ;;  %463 = vmatpush.msra.mxu3 %v1945_v54 }
  0xd2   : > { %444 = vmatpush.msra.mxu2 %v1950_v56  ;;  %352 = vmatpush.msra.mxu1 %v1935_v47 }
  0xd3   : > { %464 = vmatpush.msra.mxu3 %v1953_v60  ;;  %333 = vmatpush.msra.mxu0 %v1940_v15 }
  0xd4   : > { %445 = vmatpush.msra.mxu2 %v1958_v61  ;;  %353 = vmatpush.msra.mxu1 %v1945_v54 }
  0xd5   : > { %465 = vmatpush.msra.mxu3 %v1961_v62  ;;  %334 = vmatpush.msra.mxu0 %v1950_v56 }
  0xd6   : > { %652 = vmatpush.msrb.mxu2 %v1802_v51  ;;  %354 = vmatpush.msra.mxu1 %v1953_v60 }
  0xd7   : > { %672 = vmatpush.msrb.mxu3 %v1804_v52  ;;  %335 = vmatpush.msra.mxu0 %v1958_v61 }
  0xd8   : > { %932 = vadd.xlane.f32.xlu1 %v931_v50  ;;  %653 = vmatpush.msrb.mxu2 %v1806_v53 }
  0xd9   : > { %673 = vmatpush.msrb.mxu3 %v1809_v55  ;;  %355 = vmatpush.msra.mxu1 %v1961_v62 }
  0xda   : > { %654 = vmatpush.msrb.mxu2 %v1812_v57  ;;  %541 = vmatpush.msrb.mxu0 %v1802_v51 }
  0xdb   : > { %674 = vmatpush.msrb.mxu3 %v1816_v58  ;;  %561 = vmatpush.msrb.mxu1 %v1804_v52 }
  0xdc   : > { %655 = vmatpush.msrb.mxu2 %v1827_v63  ;;  %542 = vmatpush.msrb.mxu0 %v1806_v53 }
  0xdd   : > { %675 = vmatpush.msrb.mxu3 %v1835_v1  ;;  %562 = vmatpush.msrb.mxu1 %v1809_v55 }
  0xde   : > { %656 = vmatpush.msrb.mxu2 %v1839_v4  ;;  %543 = vmatpush.msrb.mxu0 %v1812_v57 }
  0xdf   : > { %676 = vmatpush.msrb.mxu3 %v1848_v8  ;;  %563 = vmatpush.msrb.mxu1 %v1816_v58 }
  0xe0   : > { %657 = vmatpush.msrb.mxu2 %v1854_v17  ;;  %544 = vmatpush.msrb.mxu0 %v1827_v63 }
  0xe1   : > { %677 = vmatpush.msrb.mxu3 %v1857_v9  ;;  %564 = vmatpush.msrb.mxu1 %v1835_v1 }
  0xe2   : > { %658 = vmatpush.msrb.mxu2 %v1861_v10  ;;  %545 = vmatpush.msrb.mxu0 %v1839_v4 }
  0xe3   : > { %678 = vmatpush.msrb.mxu3 %v1869_v20  ;;  %565 = vmatpush.msrb.mxu1 %v1848_v8 }
  0xe4   : > { %659 = vmatpush.msrb.mxu2 %v1877_v23  ;;  %546 = vmatpush.msrb.mxu0 %v1854_v17 }
  0xe5   : > { %679 = vmatpush.msrb.mxu3 %v1881_v25  ;;  %566 = vmatpush.msrb.mxu1 %v1857_v9 }
  0xe6   : > { %660 = vmatpush.msrb.mxu2 %v1890_v32  ;;  %547 = vmatpush.msrb.mxu0 %v1861_v10 }
  0xe7   : > { %680 = vmatpush.msrb.mxu3 %v1893_v33  ;;  %567 = vmatpush.msrb.mxu1 %v1869_v20 }
  0xe8   : > { %661 = vmatpush.msrb.mxu2 %v1896_v35  ;;  %548 = vmatpush.msrb.mxu0 %v1877_v23 }
  0xe9   : > { %681 = vmatpush.msrb.mxu3 %v1900_v12  ;;  %568 = vmatpush.msrb.mxu1 %v1881_v25 }
  0xea   : > { %662 = vmatpush.msrb.mxu2 %v1911_v41  ;;  %549 = vmatpush.msrb.mxu0 %v1890_v32 }
  0xeb   : > { %682 = vmatpush.msrb.mxu3 %v1919_v42  ;;  %569 = vmatpush.msrb.mxu1 %v1893_v33 }
  0xec   : > { %663 = vmatpush.msrb.mxu2 %v1923_v43  ;;  %550 = vmatpush.msrb.mxu0 %v1896_v35 }
  0xed   : > { %683 = vmatpush.msrb.mxu3 %v1929_v45  ;;  %570 = vmatpush.msrb.mxu1 %v1900_v12 }
  0xee   : > { %664 = vmatpush.msrb.mxu2 %v1932_v46  ;;  %551 = vmatpush.msrb.mxu0 %v1911_v41 }
  0xef   : > { %684 = vmatpush.msrb.mxu3 %v1935_v47  ;;  %571 = vmatpush.msrb.mxu1 %v1919_v42 }
  0xf0   : > { %665 = vmatpush.msrb.mxu2 %v1940_v15  ;;  %552 = vmatpush.msrb.mxu0 %v1923_v43 }
  0xf1   : > { %685 = vmatpush.msrb.mxu3 %v1945_v54  ;;  %572 = vmatpush.msrb.mxu1 %v1929_v45 }
  0xf2   : > { %666 = vmatpush.msrb.mxu2 %v1950_v56  ;;  %553 = vmatpush.msrb.mxu0 %v1932_v46 }
  0xf3   : > { %686 = vmatpush.msrb.mxu3 %v1953_v60  ;;  %573 = vmatpush.msrb.mxu1 %v1935_v47 }
  0xf4   : > { %667 = vmatpush.msrb.mxu2 %v1958_v61  ;;  %554 = vmatpush.msrb.mxu0 %v1940_v15 }
  0xf5   : > { %687 = vmatpush.msrb.mxu3 %v1961_v62  ;;  %574 = vmatpush.msrb.mxu1 %v1945_v54 }
  0xf6   : > { %555 = vmatpush.msrb.mxu0 %v1950_v56 }
  0xf7   : > { %575 = vmatpush.msrb.mxu1 %v1953_v60 }
  0xf8   : > { %556 = vmatpush.msrb.mxu0 %v1958_v61 }
  0xf9   : > { %576 = vmatpush.msrb.mxu1 %v1961_v62 }
 0x123   : > { %v378_v0 = vpop.xlane.xlu2 %377  ;;  %v375_v2 = vpop.xlane.xlu1 %374 }
 0x124   : > { %v260_v3 = vpop.xlane.xlu0 %259  ;;  %v379_v7 = vadd.f32 %v378_v0, %v375_v2 }
 0x126   : > { %v380_v18 = vmul.f32 0.00390625, %v379_v7 }
 0x128   : > { %v381_v11 = vadd.f32 1e-05, %v380_v18 }
 0x12a   : > { %1396 = vrsqrt.f32 %v381_v11  ;;  %vm388_vm1 = vweird.f32 %v381_v11 }
 0x12b   : > { %v597_v19 = vpop.xlane.xlu2 %596  ;;  %v263_v21 = vpop.xlane.xlu1 %262 }
 0x12c   : > { %v600_v22 = vpop.xlane.xlu0 %599  ;;  %v264_v24 = vadd.f32 %v263_v21, %v260_v3 }
 0x12d   : > { %v601_v31 = vadd.f32 %v600_v22, %v597_v19 }
 0x12e   : > { %v265_v34 = vmul.f32 0.00390625, %v264_v24 }
 0x12f   : > { %v602_v37 = vmul.f32 0.00390625, %v601_v31  ;;  %v2041_v31 = vld [vmem:[#allocation5 + $0x1] ss:$0 sm:$0xff] }
 0x130   : > { %v1397_v38 = vpop.eup %1396  ;;  %v266_v14 = vadd.f32 1e-05, %v265_v34  ;;  %v2043_v34 = vld [vmem:[#allocation5] ss:$0 sm:$0xff] }
 0x131   : > { %v383_v50 = vmul.f32 %v1397_v38, %v381_v11  ;;  %v603_v61 = vadd.f32 1e-05, %v602_v37  ;;  %vm389_vm0 = vweird.f32 %v1397_v38 }
 0x132   : > { %1398 = vrsqrt.f32 %v266_v14  ;;  %vm390_vm2 = vmor %vm388_vm1, %vm389_vm0  ;;  %vm273_vm7 = vweird.f32 %v266_v14 }
 0x133   : > { %v384_v62 = vmul.f32 %v1397_v38, %v383_v50  ;;  %1400 = vrsqrt.f32 %v603_v61  ;;  %v489_v44 = vpop.xlane.xlu2 %488  ;;  %v486_v13 = vpop.xlane.xlu1 %485  ;;  %vm610_vm3 = vweird.f32 %v603_v61 }
 0x134   : > { %v819_v0 = vpop.xlane.xlu0 %818  ;;  %v490_v2 = vadd.f32 %v489_v44, %v486_v13 }
 0x135   : > { %v385_v7 = vmul.f32 0.5, %v384_v62 }
 0x136   : > { %v491_v18 = vmul.f32 0.00390625, %v490_v2 }
 0x137   : > { %v386_v6 = vsub.f32 1.5, %v385_v7 }
 0x138   : > { %v1399_v60 = vpop.eup %1398  ;;  %v2038_v3 = vadd.f32 1e-05, %v491_v18  ;;  %v2045_v18 = vld [vmem:[#allocation5 + $0x3] ss:$0 sm:$0xff] }
 0x139   : > { %v1401_v19 = vpop.eup %1400  ;;  %v268_v21 = vmul.f32 %v1399_v60, %v266_v14  ;;  %v387_v22 = vmul.f32 %v1397_v38, %v386_v6  ;;  %v2048_v6 = vld [vmem:[#allocation5 + $0x2] ss:$0 sm:$0xff]  ;;  %vm274_vm5 = vweird.f32 %v1399_v60 }
 0x13a   : > { %v605_v24 = vmul.f32 %v1401_v19, %v603_v61  ;;  %1402 = vrsqrt.f32 %v2038_v3  ;;  %vm611_vm4 = vweird.f32 %v1401_v19  ;;  %vm275_vm8 = vmor %vm273_vm7, %vm274_vm5  ;;  %vm499_vm9 = vweird.f32 %v2038_v3 }
 0x13b   : > { %v269_v13 = vmul.f32 %v1399_v60, %v268_v21  ;;  %v708_v44 = vpop.xlane.xlu2 %707  ;;  %v822_v62 = vpop.xlane.xlu1 %821  ;;  %v391_v37 = vsel %vm390_vm2, %v1397_v38, %v387_v22  ;;  %vm2061_vm6 = vmor %vm610_vm3, %vm611_vm4 }
 0x13c   : > { %v606_v50 = vmul.f32 %v1401_v19, %v605_v24  ;;  %v711_v2 = vpop.xlane.xlu0 %710  ;;  %v823_v7 = vadd.f32 %v822_v62, %v819_v0  ;;  %v395_v11 = vmul.f32 %v391_v37, %v1776_v28  ;;  %v392_v56 = vmul.f32 %v391_v37, %v1774_v27 }
 0x13d   : > { %v270_v16 = vmul.f32 0.5, %v269_v13  ;;  %v712_v54 = vadd.f32 %v711_v2, %v708_v44 }
 0x13e   : > { %v607_v15 = vmul.f32 0.5, %v606_v50  ;;  %v824_v21 = vmul.f32 0.00390625, %v823_v7  ;;  %v396_v47 = vmul.f32 %v2041_v31, %v395_v11  ;;  %v393_v38 = vmul.f32 %v2043_v34, %v392_v56 }
 0x13f   : > { %v271_v22 = vsub.f32 1.5, %v270_v16  ;;  %v713_v0 = vmul.f32 0.00390625, %v712_v54 }
 0x140   : > { %v2053_v24 = vpop.eup %1402  ;;  %v608_v28 = vsub.f32 1.5, %v607_v15  ;;  %v2055_v62 = vadd.f32 1e-05, %v824_v21  ;;  %v397_v27 = vadd.f32 %v2045_v18, %v396_v47  ;;  %v394_v37 = vadd.f32 %v2048_v6, %v393_v38 }
 0x141   : > { %v494_v16 = vmul.f32 %v2053_v24, %v2038_v3  ;;  %v2067_v54 = vadd.f32 1e-05, %v713_v0  ;;  %v272_v56 = vmul.f32 %v1399_v60, %v271_v22  ;;  %vm500_vm10 = vweird.f32 %v2053_v24 }
 0x142   : > { %v609_v15 = vmul.f32 %v1401_v19, %v608_v28  ;;  %1404 = vrsqrt.f32 %v2055_v62  ;;  %446 = vmatmul.f32.vlgmr.msra.gmra.mxu2 %v397_v27  ;;  %466 = vmatmul.f32.vlgmr.msra.gmra.mxu3 %v394_v37  ;;  %vm2094_vm11 = vmor %vm499_vm9, %vm500_vm10  ;;  %vm832_vm12 = vweird.f32 %v2055_v62 }
 0x143   : > { %v495_v47 = vmul.f32 %v2053_v24, %v494_v16  ;;  %1406 = vrsqrt.f32 %v2067_v54  ;;  %874 = vmatpush.msra.mxu2 %v1802_v51  ;;  %894 = vmatpush.msra.mxu3 %v1804_v52  ;;  %v1044_v61 = vpop.xlane.xlu2 %1043  ;;  %v1041_v14 = vpop.xlane.xlu1 %1040  ;;  %v276_v44 = vsel %vm275_vm8, %v1399_v60, %v272_v56  ;;  %vm721_vm2 = vweird.f32 %v2067_v54 }
 0x144   : > { %v1045_v50 = vadd.f32 %v1044_v61, %v1041_v14  ;;  %v282_v2 = vmul.f32 %v276_v44, %v1790_v40  ;;  %v277_v7 = vmul.f32 %v276_v44, %v1778_v29  ;;  %v613_v11 = vsel %vm2061_vm6, %v1401_v19, %v609_v15 }
 0x145   : > { %v496_v21 = vmul.f32 0.5, %v495_v47  ;;  %875 = vmatpush.msra.mxu2 %v1806_v53  ;;  %895 = vmatpush.msra.mxu3 %v1809_v55  ;;  %v617_v38 = vmul.f32 %v613_v11, %v1788_v39  ;;  %v614_v22 = vmul.f32 %v613_v11, %v1786_v36  ;;  %v930_v47 = vpop.xlane.xlu0 %929 }
 0x146   : > { %v1046_v60 = vmul.f32 0.00390625, %v1045_v50  ;;  %v284_v0 = vmul.f32 %v2041_v31, %v282_v2  ;;  %v279_v40 = vmul.f32 %v2043_v34, %v277_v7 }
 0x147   : > { %v497_v29 = vsub.f32 1.5, %v496_v21  ;;  %876 = vmatpush.msra.mxu2 %v1812_v57  ;;  %896 = vmatpush.msra.mxu3 %v1816_v58  ;;  %v618_v19 = vmul.f32 %v2041_v31, %v617_v38  ;;  %v615_v28 = vmul.f32 %v2043_v34, %v614_v22 }
 0x148   : > { %v2090_v27 = vpop.eup %1404  ;;  %v2098_v39 = vadd.f32 1e-05, %v1046_v60  ;;  %v286_v37 = vadd.f32 %v2045_v18, %v284_v0  ;;  %v281_v13 = vadd.f32 %v2048_v6, %v279_v40 }
 0x149   : > { %v2102_v16 = vpop.eup %1406  ;;  %v498_v56 = vmul.f32 %v2053_v24, %v497_v29  ;;  %v827_v15 = vmul.f32 %v2090_v27, %v2055_v62  ;;  %877 = vmatpush.msra.mxu2 %v1827_v63  ;;  %897 = vmatpush.msra.mxu3 %v1835_v1  ;;  %v619_v3 = vadd.f32 %v2045_v18, %v618_v19  ;;  %vm833_vm13 = vweird.f32 %v2090_v27 }
 0x14a   : > { %v716_v61 = vmul.f32 %v2102_v16, %v2067_v54  ;;  %1408 = vrsqrt.f32 %v2098_v39  ;;  %336 = vmatmul.f32.vlgmr.msra.gmra.mxu0 %v286_v37  ;;  %356 = vmatmul.f32.vlgmr.msra.gmra.mxu1 %v281_v13  ;;  %v616_v44 = vadd.f32 %v2048_v6, %v615_v28  ;;  %vm834_vm14 = vmor %vm832_vm12, %vm833_vm13  ;;  %vm1054_vm15 = vweird.f32 %v2098_v39 }
 0x14b   : > { %v828_v14 = vmul.f32 %v2090_v27, %v827_v15  ;;  %668 = vmatmul.f32.vlgmr.msrb.gmra.mxu2 %v619_v3  ;;  %763 = vmatpush.msra.mxu0 %v1802_v51  ;;  %v933_v50 = vpop.xlane.xlu1 %932  ;;  %v502_v2 = vsel %vm2094_vm11, %v2053_v24, %v498_v56  ;;  %vm722_vm3 = vweird.f32 %v2102_v16  ;;  %v2334_v56 = vld [vmem:[#allocation19_spill] sm:$0xff]  ;;  %v2335_v15 = vld [vmem:[#allocation20_spill] sm:$0xff] }
 0x14c   : > { %783 = vmatpush.msra.mxu1 %v1804_v52  ;;  %878 = vmatpush.msra.mxu2 %v1839_v4  ;;  %v934_v7 = vadd.f32 %v933_v50, %v930_v47  ;;  %v506_v11 = vmul.f32 %v502_v2, %v1800_v49  ;;  %v503_v38 = vmul.f32 %v502_v2, %v1798_v48  ;;  %vm723_vm4 = vmor %vm721_vm2, %vm722_vm3 }
 0x14d   : > { %v829_v21 = vmul.f32 0.5, %v828_v14  ;;  %688 = vmatmul.f32.vlgmr.msrb.gmra.mxu3 %v616_v44  ;;  %764 = vmatpush.msra.mxu0 %v1806_v53  ;;  %v717_v51 = vmul.f32 %v2102_v16, %v716_v61  ;;  %v1095_v14 = vld [vmem:[#allocation7 + $0xf8] sm:$0xff] }
 0x14e   : > { %898 = vmatpush.msra.mxu3 %v1848_v8  ;;  %v935_v22 = vmul.f32 0.00390625, %v934_v7  ;;  %784 = vmatpush.msra.mxu1 %v1809_v55  ;;  %v507_v52 = vmul.f32 %v2041_v31, %v506_v11  ;;  %v504_v49 = vmul.f32 %v2043_v34, %v503_v38  ;;  %v1079_v44 = vld [vmem:[#allocation7 + $0x78] sm:$0xff]  ;;  %v2340_v38 = vld [vmem:[#allocation22_spill] sm:$0xff] }
 0x14f   : > { %v830_v24 = vsub.f32 1.5, %v829_v21  ;;  %879 = vmatpush.msra.mxu2 %v1854_v17  ;;  %765 = vmatpush.msra.mxu0 %v1812_v57  ;;  %v718_v0 = vmul.f32 0.5, %v717_v51  ;;  %v2338_v7 = vld [vmem:[#allocation15_spill] sm:$0xff]  ;;  %v2339_v21 = vld [vmem:[#allocation21_spill] sm:$0xff] }
 0x150   : > { %v1409_v60 = vpop.eup %1408  ;;  %v2131_v53 = vadd.f32 1e-05, %v935_v22  ;;  %899 = vmatpush.msra.mxu3 %v1857_v9  ;;  %785 = vmatpush.msra.mxu1 %v1816_v58  ;;  %v508_v48 = vadd.f32 %v2045_v18, %v507_v52  ;;  %v505_v57 = vadd.f32 %v2048_v6, %v504_v49  ;;  %v1093_v52 = vld [vmem:[#allocation7 + $0xe8] sm:$0xff] }
 0x151   : > { %v1049_v55 = vmul.f32 %v1409_v60, %v2098_v39  ;;  %880 = vmatpush.msra.mxu2 %v1861_v10  ;;  %766 = vmatpush.msra.mxu0 %v1827_v63  ;;  %v831_v58 = vmul.f32 %v2090_v27, %v830_v24  ;;  %vm1055_vm0 = vweird.f32 %v1409_v60  ;;  %v719_v40 = vsub.f32 1.5, %v718_v0  ;;  %v2332_v39 = vld [vmem:[#allocation18_spill] sm:$0xff]  ;;  %v1077_v24 = vld [vmem:[#allocation7 + $0x68] sm:$0xff]  ;;  %v1075_v0 = vld [vmem:[#allocation7 + $0x58] sm:$0xff] }
 0x152   : > { %1410 = vrsqrt.f32 %v2131_v53  ;;  %900 = vmatpush.msra.mxu3 %v1869_v20  ;;  %786 = vmatpush.msra.mxu1 %v1835_v1  ;;  %vm1056_vm1 = vmor %vm1054_vm15, %vm1055_vm0  ;;  %vm943_vm5 = vweird.f32 %v2131_v53 }
 0x153   : > { %v1050_v62 = vmul.f32 %v1409_v60, %v1049_v55  ;;  %881 = vmatpush.msra.mxu2 %v1877_v23  ;;  %557 = vmatmul.f32.vlgmr.msrb.gmra.mxu0 %v508_v48  ;;  %v835_v1 = vsel %vm834_vm14, %v2090_v27, %v831_v58  ;;  %v1076_v55 = vld [vmem:[#allocation7 + $0x60] sm:$0xff]  ;;  %v1090_v58 = vld [vmem:[#allocation7 + $0xd0] sm:$0xff] }
 0x154   : > { %901 = vmatpush.msra.mxu3 %v1881_v25  ;;  %577 = vmatmul.f32.vlgmr.msrb.gmra.mxu1 %v505_v57  ;;  %v839_v28 = vmul.f32 %v835_v1, %v1843_v5  ;;  %v2330_v5 = vld [vmem:[#allocation16_spill] sm:$0xff]  ;;  %v1091_v57 = vld [vmem:[#allocation7 + $0xd8] sm:$0xff] }
 0x155   : > { %v1051_v63 = vmul.f32 0.5, %v1050_v62  ;;  %767 = vmatpush.msra.mxu0 %v1839_v4  ;;  %787 = vmatpush.msra.mxu1 %v1848_v8  ;;  %v1074_v62 = vld [vmem:[#allocation7 + $0x50] sm:$0xff] }
 0x156   : > { %882 = vmatpush.msra.mxu2 %v1890_v32  ;;  %902 = vmatpush.msra.mxu3 %v1893_v33  ;;  %v840_v54 = vmul.f32 %v2041_v31, %v839_v28  ;;  %v1068_v28 = vld [vmem:[#allocation7 + $0x20] sm:$0xff] }
 0x157   : > { %v1052_v29 = vsub.f32 1.5, %v1051_v63  ;;  %768 = vmatpush.msra.mxu0 %v1854_v17  ;;  %788 = vmatpush.msra.mxu1 %v1857_v9  ;;  %v720_v17 = vmul.f32 %v2102_v16, %v719_v40  ;;  %v836_v9 = vmul.f32 %v835_v1, %v1820_v59  ;;  %v1089_v63 = vld [vmem:[#allocation7 + $0xc8] sm:$0xff]  ;;  %v1072_v40 = vld [vmem:[#allocation7 + $0x40] sm:$0xff]  ;;  %v1087_v1 = vld [vmem:[#allocation7 + $0xb8] sm:$0xff] }
 0x158   : > { %v1411_v19 = vpop.eup %1410  ;;  %883 = vmatpush.msra.mxu2 %v1896_v35  ;;  %903 = vmatpush.msra.mxu3 %v1900_v12  ;;  %v841_v47 = vadd.f32 %v2045_v18, %v840_v54 }
 0x159   : > { %v1053_v4 = vmul.f32 %v1409_v60, %v1052_v29  ;;  %v938_v8 = vmul.f32 %v1411_v19, %v2131_v53  ;;  %769 = vmatpush.msra.mxu0 %v1861_v10  ;;  %789 = vmatpush.msra.mxu1 %v1869_v20  ;;  %vm944_vm6 = vweird.f32 %v1411_v19  ;;  %v1071_v29 = vld [vmem:[#allocation7 + $0x38] sm:$0xff] }
 0x15a   : > { %884 = vmatpush.msra.mxu2 %v1911_v41  ;;  %904 = vmatpush.msra.mxu3 %v1919_v42  ;;  %vm945_vm7 = vmor %vm943_vm5, %vm944_vm6 }
 0x15b   : > { %v1057_v27 = vsel %vm1056_vm1, %v1409_v60, %v1053_v4  ;;  %v939_v36 = vmul.f32 %v1411_v19, %v938_v8  ;;  %770 = vmatpush.msra.mxu0 %v1877_v23  ;;  %790 = vmatpush.msra.mxu1 %v1881_v25  ;;  %v1070_v4 = vld [vmem:[#allocation7 + $0x30] sm:$0xff]  ;;  %v1085_v8 = vld [vmem:[#allocation7 + $0xa8] sm:$0xff] }
 0x15c   : > { %v1058_v10 = vmul.f32 %v1057_v27, %v1885_v26  ;;  %v1061_v20 = vmul.f32 %v1057_v27, %v1888_v30  ;;  %885 = vmatpush.msra.mxu2 %v1923_v43  ;;  %905 = vmatpush.msra.mxu3 %v1929_v45  ;;  %v724_v26 = vsel %vm723_vm4, %v2102_v16, %v720_v17  ;;  %v1069_v17 = vld [vmem:[#allocation7 + $0x28] sm:$0xff]  ;;  %v1083_v27 = vld [vmem:[#allocation7 + $0x98] sm:$0xff] }
 0x15d   : > { %v940_v59 = vmul.f32 0.5, %v939_v36  ;;  %771 = vmatpush.msra.mxu0 %v1890_v32  ;;  %791 = vmatpush.msra.mxu1 %v1893_v33  ;;  %v837_v32 = vmul.f32 %v2043_v34, %v836_v9  ;;  %v2331_v33 = vld [vmem:[#allocation17_spill] sm:$0xff]  ;;  %v1084_v9 = vld [vmem:[#allocation7 + $0xa0] sm:$0xff]  ;;  %v1067_v36 = vld [vmem:[#allocation7 + $0x18] sm:$0xff] }
 0x15e   : > { %886 = vmatpush.msra.mxu2 %v1932_v46  ;;  %906 = vmatpush.msra.mxu3 %v2330_v5  ;;  %v1062_v23 = vmul.f32 %v2041_v31, %v1061_v20  ;;  %v1059_v25 = vmul.f32 %v2043_v34, %v1058_v10  ;;  %v1082_v10 = vld [vmem:[#allocation7 + $0x90] sm:$0xff] }
 0x15f   : > { %v941_v30 = vsub.f32 1.5, %v940_v59  ;;  %772 = vmatpush.msra.mxu0 %v1896_v35  ;;  %792 = vmatpush.msra.mxu1 %v1900_v12  ;;  %v2333_v35 = vld [vmem:[#allocation13_spill] sm:$0xff]  ;;  %v838_v61 = vadd.f32 %v2048_v6, %v837_v32  ;;  %v1066_v20 = vld [vmem:[#allocation7 + $0x10] sm:$0xff] }
 0x160   : > { %887 = vmatpush.msra.mxu2 %v2331_v33  ;;  %907 = vmatpush.msra.mxu3 %v2332_v39  ;;  %v2191_v37 = vadd.f32 %v2045_v18, %v1062_v23  ;;  %v2194_v13 = vadd.f32 %v2048_v6, %v1059_v25  ;;  %v728_v12 = vmul.f32 %v724_v26, %v2333_v35  ;;  %v1081_v59 = vld [vmem:[#allocation7 + $0x88] sm:$0xff]  ;;  %v1080_v23 = vld [vmem:[#allocation7 + $0x80] sm:$0xff] }
 0x161   : > { %v942_v16 = vmul.f32 %v1411_v19, %v941_v30  ;;  %773 = vmatpush.msra.mxu0 %v1911_v41  ;;  %793 = vmatpush.msra.mxu1 %v1919_v42  ;;  %v2336_v41 = vld [vmem:[#allocation12_spill] sm:$0xff]  ;;  %v2337_v42 = vld [vmem:[#allocation14_spill] sm:$0xff] }
 0x162   : > { %888 = vmatpush.msra.mxu2 %v2334_v56  ;;  %908 = vmatpush.msra.mxu3 %v2335_v15  ;;  %v725_v50 = vmul.f32 %v724_v26, %v2336_v41  ;;  %v729_v49 = vmul.f32 %v2041_v31, %v728_v12  ;;  %v1064_v25 = vld [vmem:[#allocation7] sm:$0xff] }
 0x163   : > { %v946_v3 = vsel %vm945_vm7, %v1411_v19, %v942_v16  ;;  %774 = vmatpush.msra.mxu0 %v1923_v43  ;;  %794 = vmatpush.msra.mxu1 %v1929_v45  ;;  %v1094_v43 = vld [vmem:[#allocation7 + $0xf0] sm:$0xff] }
 0x164   : > { %v947_v2 = vmul.f32 %v946_v3, %v2337_v42  ;;  %v950_v11 = vmul.f32 %v946_v3, %v2338_v7  ;;  %889 = vmatpush.msra.mxu2 %v2339_v21  ;;  %909 = vmatpush.msra.mxu3 %v2340_v38  ;;  %v1078_v45 = vld [vmem:[#allocation7 + $0x70] sm:$0xff]  ;;  %v726_v60 = vmul.f32 %v2043_v34, %v725_v50 }
 0x165   : > { %890 = vmatmul.f32.vlgmr.msra.gmra.mxu2 %v841_v47  ;;  %910 = vmatmul.f32.vlgmr.msra.gmra.mxu3 %v838_v61  ;;  %v1086_v19 = vld [vmem:[#allocation7 + $0xb0] sm:$0xff] }
 0x166   : > { %1096 = vmatpush.msrb.mxu2 %v1095_v14  ;;  %1116 = vmatpush.msrb.mxu3 %v1079_v44  ;;  %v951_v51 = vmul.f32 %v2041_v31, %v950_v11  ;;  %v948_v22 = vmul.f32 %v2043_v34, %v947_v2  ;;  %v730_v31 = vadd.f32 %v2045_v18, %v729_v49 }
 0x167   : > { %775 = vmatpush.msra.mxu0 %v1932_v46  ;;  %795 = vmatpush.msra.mxu1 %v2330_v5  ;;  %v1092_v46 = vld [vmem:[#allocation7 + $0xe0] sm:$0xff]  ;;  %v727_v34 = vadd.f32 %v2048_v6, %v726_v60  ;;  %v1065_v5 = vld [vmem:[#allocation7 + $0x8] sm:$0xff] }
 0x168   : > { %1097 = vmatpush.msrb.mxu2 %v1094_v43  ;;  %1117 = vmatpush.msrb.mxu3 %v1078_v45  ;;  %v2217_v53 = vadd.f32 %v2045_v18, %v951_v51  ;;  %v2220_v48 = vadd.f32 %v2048_v6, %v948_v22  ;;  %v1073_v18 = vld [vmem:[#allocation7 + $0x48] sm:$0xff]  ;;  %v1088_v6 = vld [vmem:[#allocation7 + $0xc0] sm:$0xff] }
 0x169   : > { %776 = vmatpush.msra.mxu0 %v2331_v33  ;;  %796 = vmatpush.msra.mxu1 %v2332_v39 }
 0x16a   : > { %1098 = vmatpush.msrb.mxu2 %v1093_v52  ;;  %1118 = vmatpush.msrb.mxu3 %v1077_v24 }
 0x16b   : > { %777 = vmatpush.msra.mxu0 %v2334_v56  ;;  %797 = vmatpush.msra.mxu1 %v2335_v15 }
 0x16c   : > { %1099 = vmatpush.msrb.mxu2 %v1092_v46  ;;  %1119 = vmatpush.msrb.mxu3 %v1076_v55 }
 0x16d   : > { %778 = vmatpush.msra.mxu0 %v2339_v21  ;;  %798 = vmatpush.msra.mxu1 %v2340_v38 }
 0x16e   : > { %779 = vmatmul.f32.vlgmr.msra.gmra.mxu0 %v730_v31  ;;  %799 = vmatmul.f32.vlgmr.msra.gmra.mxu1 %v727_v34 }
 0x16f   : > { %985 = vmatpush.msrb.mxu0 %v1095_v14  ;;  %1005 = vmatpush.msrb.mxu1 %v1079_v44 }
 0x170   : > { %1100 = vmatpush.msrb.mxu2 %v1091_v57  ;;  %1120 = vmatpush.msrb.mxu3 %v1075_v0 }
 0x171   : > { %986 = vmatpush.msrb.mxu0 %v1094_v43  ;;  %1006 = vmatpush.msrb.mxu1 %v1078_v45 }
 0x172   : > { %1101 = vmatpush.msrb.mxu2 %v1090_v58  ;;  %1121 = vmatpush.msrb.mxu3 %v1074_v62 }
 0x173   : > { %987 = vmatpush.msrb.mxu0 %v1093_v52  ;;  %1007 = vmatpush.msrb.mxu1 %v1077_v24 }
 0x174   : > { %1102 = vmatpush.msrb.mxu2 %v1089_v63  ;;  %1122 = vmatpush.msrb.mxu3 %v1073_v18 }
 0x175   : > { %988 = vmatpush.msrb.mxu0 %v1092_v46  ;;  %1008 = vmatpush.msrb.mxu1 %v1076_v55 }
 0x176   : > { %1103 = vmatpush.msrb.mxu2 %v1088_v6  ;;  %1123 = vmatpush.msrb.mxu3 %v1072_v40 }
 0x177   : > { %989 = vmatpush.msrb.mxu0 %v1091_v57  ;;  %1009 = vmatpush.msrb.mxu1 %v1075_v0 }
 0x178   : > { %1104 = vmatpush.msrb.mxu2 %v1087_v1  ;;  %1124 = vmatpush.msrb.mxu3 %v1071_v29 }
 0x179   : > { %990 = vmatpush.msrb.mxu0 %v1090_v58  ;;  %1010 = vmatpush.msrb.mxu1 %v1074_v62 }
 0x17a   : > { %1105 = vmatpush.msrb.mxu2 %v1086_v19  ;;  %1125 = vmatpush.msrb.mxu3 %v1070_v4 }
 0x17b   : > { %991 = vmatpush.msrb.mxu0 %v1089_v63  ;;  %1011 = vmatpush.msrb.mxu1 %v1073_v18 }
 0x17c   : > { %1106 = vmatpush.msrb.mxu2 %v1085_v8  ;;  %1126 = vmatpush.msrb.mxu3 %v1069_v17 }
 0x17d   : > { %992 = vmatpush.msrb.mxu0 %v1088_v6  ;;  %1012 = vmatpush.msrb.mxu1 %v1072_v40 }
 0x17e   : > { %1107 = vmatpush.msrb.mxu2 %v1084_v9  ;;  %1127 = vmatpush.msrb.mxu3 %v1068_v28 }
 0x17f   : > { %993 = vmatpush.msrb.mxu0 %v1087_v1  ;;  %1013 = vmatpush.msrb.mxu1 %v1071_v29 }
 0x180   : > { %1108 = vmatpush.msrb.mxu2 %v1083_v27  ;;  %1128 = vmatpush.msrb.mxu3 %v1067_v36 }
 0x181   : > { %994 = vmatpush.msrb.mxu0 %v1086_v19  ;;  %1014 = vmatpush.msrb.mxu1 %v1070_v4 }
 0x182   : > { %1109 = vmatpush.msrb.mxu2 %v1082_v10  ;;  %1129 = vmatpush.msrb.mxu3 %v1066_v20 }
 0x183   : > { %995 = vmatpush.msrb.mxu0 %v1085_v8  ;;  %1015 = vmatpush.msrb.mxu1 %v1069_v17 }
 0x184   : > { %1110 = vmatpush.msrb.mxu2 %v1081_v59  ;;  %1130 = vmatpush.msrb.mxu3 %v1065_v5 }
 0x185   : > { %996 = vmatpush.msrb.mxu0 %v1084_v9  ;;  %1016 = vmatpush.msrb.mxu1 %v1068_v28 }
 0x186   : > { %1111 = vmatpush.msrb.mxu2 %v1080_v23  ;;  %1131 = vmatpush.msrb.mxu3 %v1064_v25 }
 0x187   : > { %1112 = vmatmul.f32.vlgmr.msrb.gmra.mxu2 %v2191_v37  ;;  %1132 = vmatmul.f32.vlgmr.msrb.gmra.mxu3 %v2194_v13 }
 0x188   : > { %997 = vmatpush.msrb.mxu0 %v1083_v27  ;;  %1017 = vmatpush.msrb.mxu1 %v1067_v36 }
 0x18a   : > { %998 = vmatpush.msrb.mxu0 %v1082_v10  ;;  %1018 = vmatpush.msrb.mxu1 %v1066_v20 }
 0x18c   : > { %999 = vmatpush.msrb.mxu0 %v1081_v59  ;;  %1019 = vmatpush.msrb.mxu1 %v1065_v5 }
 0x18e   : > { %1000 = vmatpush.msrb.mxu0 %v1080_v23  ;;  %1020 = vmatpush.msrb.mxu1 %v1064_v25 }
 0x18f   : > { %1001 = vmatmul.f32.vlgmr.msrb.gmra.mxu0 %v2217_v53  ;;  %1021 = vmatmul.f32.vlgmr.msrb.gmra.mxu1 %v2220_v48 }
 0x1c5   : > { %v447_v26 = vpop.f32.mrf.mxu2  ;;  %v467_v30 = vpop.f32.mrf.mxu3 }
 0x1c6   : > { %v468_v54 = vadd.f32 %v467_v30, %v447_v26 }
 0x1c7   : > { %v337_v32 = vpop.f32.mrf.mxu0  ;;  %v357_v33 = vpop.f32.mrf.mxu1 }
 0x1c8   : > { %1279 = vst [vmem:[%s2235_s21 + $0x8] sm:$0xff] %v468_v54  ;;  %v358_v39 = vadd.f32 %v357_v33, %v337_v32 }
 0x1ca   : > { %360 = vst [vmem:[%s2235_s21] sm:$0xff] %v358_v39 }
 0x1ce   : > { %v669_v37 = vpop.f32.mrf.mxu2 }
 0x1d0   : > { %v689_v13 = vpop.f32.mrf.mxu3  ;;  %v558_v16 = vpop.f32.mrf.mxu0 }
 0x1d1   : > { %v690_v35 = vadd.f32 %v689_v13, %v669_v37  ;;  %v578_v12 = vpop.f32.mrf.mxu1 }
 0x1d2   : > { %v579_v56 = vadd.f32 %v578_v12, %v558_v16 }
 0x1d3   : > { %1285 = vst [vmem:[%s2235_s21 + $0x18] sm:$0xff] %v690_v35 }
 0x1d4   : > { %1282 = vst [vmem:[%s2235_s21 + $0x10] sm:$0xff] %v579_v56 }
 0x1e8   : > { %v891_v15 = vpop.f32.mrf.mxu2  ;;  %v911_v3 = vpop.f32.mrf.mxu3 }
 0x1e9   : > { %v912_v47 = vadd.f32 %v911_v3, %v891_v15 }
 0x1eb   : > { %1291 = vst [vmem:[%s2235_s21 + $0x28] sm:$0xff] %v912_v47  ;;  %v780_v61 = vpop.f32.mrf.mxu0  ;;  %v800_v14 = vpop.f32.mrf.mxu1 }
 0x1ec   : > { %v801_v44 = vadd.f32 %v800_v14, %v780_v61 }
 0x1ee   : > { %1288 = vst [vmem:[%s2235_s21 + $0x20] sm:$0xff] %v801_v44 }
 0x20a   : > { %v1113_v41 = vpop.f32.mrf.mxu2  ;;  %v1133_v50 = vpop.f32.mrf.mxu3 }
 0x20b   : > { %v1134_v42 = vadd.f32 %v1133_v50, %v1113_v41 }
 0x20c   : > { %v1002_v2 = vpop.f32.mrf.mxu0  ;;  %v1022_v7 = vpop.f32.mrf.mxu1 }
 0x20d   : > { %1297 = vst [vmem:[%s2235_s21 + $0x38] sm:$0xff] %v1134_v42  ;;  %v1023_v11 = vadd.f32 %v1022_v7, %v1002_v2 }
 0x20f   : > { %1294 = vst [vmem:[%s2235_s21 + $0x30] sm:$0xff] %v1023_v11 }
 0x210   : > { %1529 = shalt.err (!%p1526_p1)
}
 0x211   : > { %s1594_s27 = smov 128   ;;  %s1595_s30 = smov 8  }
 0x212   : > { %1315 = dma.vmem_to_hbm [thread:$0]  (%p1668_p8), %s1154_s18, 1024, %s1156_s19, %s1139_s5, %s1594_s27, %s1594_s27, %s1595_s30  }
 0x213 PF: > { %s1170_s6 = sand.u32 1, %s1568_s12   ;;  %p1329_p2 = pnand %p1267_p13, %p1672_p9 }
 0x214   : > { %s1171_s20 = scalar_lea.sflag [#allocation4], %s1170_s6 }
 0x215   : > { %p1330_p4 = pneg %p1329_p2 }
 0x217   : > { %1563 = dma.done.wait (%p1330_p4), %s1171_s20, 1024  }
 0x218   : > { %1565 = vsyncadd (%p1330_p4), %s1171_s20, 4294966272  ;;  %s20_s17 = sadd.s32 1, %s1588_s17   ;;  %s2341_s12 = smov %s1572_s13 }
 0x219   : > { %p17_p6 = scmp.ge.s32.totalorder %s20_s17, 4   ;;  %s2342_s13 = smov %s1576_s14 }
 0x21a   : > { %s2343_s14 = smov %s1715_s1  ;;  %s2344_s15 = smov %s1584_s16 }
 0x21b   : > { %s2345_s16 = smov %s2347_s26  ;;  %19 = sbr.rel (!%p17_p6) target bundleno = 9 (0x9), region = 108 }
 0x220   :  { %1177 = vsyncpa [#allocation3], 1 }
 0x221   :  { %1179 = vsyncpa [#allocation3 + $0x1], 1 }
 0x222   :  { %1180 = vsyncpa [#allocation6], 1 }
 0x223   :  { %1181 = vsyncpa [#allocation4], 1 }
 0x224   :  { %1183 = vsyncpa [#allocation4 + $0x1], 1 }

</bundles_post_ra>
